<compile_context>
chip_gen: v6e
topology: v6e:2x2x1
jax: 0.10.0
libtpu: 0.0.40
codegen_flags: <defaults>
</compile_context>

<pallas_src>
import functools

import jax
import jax.numpy as jnp
from jax import lax
from jax.experimental import pallas as pl
from jax.experimental.pallas import tpu as pltpu


def _round_up(x, m):
    return ((x + m - 1) // m) * m


def _vmem_limit_bytes():
    """Generation-aware scoped-VMEM limit (leave headroom for pipeline buffers)."""
    cap = 64 * 1024 * 1024                    # conservative fallback (safe on v7x)
    try:
        cap = int(getattr(pltpu.get_tpu_info(), "vmem_capacity_bytes", cap))
    except Exception:
        pass
    # ~3/4 of physical, never below the 32 MiB default, capped at 100 MiB.
    return max(32 * 1024 * 1024, min((cap * 3) // 4, 100 * 1024 * 1024))


# ----------------------------------------------------------------------------- kernels
def gru_recurrence_kernel(x_ref, h0_ref, wi_ref, wh_ref, bi_ref, bh_ref,
                          h_all_ref, gi_ref, *, seq_len):
    """Single invocation (no grid). Batched input-path matmul + serial GRU loop.

    x_ref:    (Tp, Hp)  f32  gathered embedding rows (padded rows/lanes are 0)
    h0_ref:   (1, Hp)   f32  initial hidden state
    wi/wh:    (Hp, 3Hp) bf16 fused gate weights, gates packed [r|z|n] along lanes
    bi/bh:    (1, 3Hp)  f32
    h_all_ref:(Tp, Hp)  f32  OUT: hidden state after every step (row t)
    gi_ref:   (Tp, 3Hp) f32  scratch: precomputed input-path gate pre-activations
    """
    hp = h0_ref.shape[-1]

    # (1) Input path hoisted out of the recurrence: one batched matmul for all steps.
    x = jnp.maximum(x_ref[...], 0.0)                       # F.relu(embedding(input))
    gi_ref[...] = jnp.dot(x.astype(jnp.bfloat16), wi_ref[...],
                          preferred_element_type=jnp.float32) + bi_ref[...]

    # Defined values for padded T rows (they feed the batched projection pass).
    h_all_ref[...] = jnp.zeros_like(h_all_ref)

    w_h = wh_ref[...]
    b_h = bh_ref[...]

    # (2) Serial recurrence: only h @ W_h + gate math per step, no grid overhead.
    def step(t, h):
        gi = gi_ref[pl.ds(t, 1), :]                        # (1, 3Hp) f32
        gh = jnp.dot(h.astype(jnp.bfloat16), w_h,
                     preferred_element_type=jnp.float32) + b_h
        r = jax.nn.sigmoid(gi[:, 0:hp] + gh[:, 0:hp])
        z = jax.nn.sigmoid(gi[:, hp:2 * hp] + gh[:, hp:2 * hp])
        n = jnp.tanh(gi[:, 2 * hp:3 * hp] + r * gh[:, 2 * hp:3 * hp])
        h_new = (1.0 - z) * n + z * h                      # padded lanes stay exactly 0
        h_all_ref[pl.ds(t, 1), :] = h_new
        return h_new

    lax.fori_loop(0, seq_len, step, h0_ref[...], unroll=(seq_len <= 16))
    # TODO(synk): for very long sequences, chunk T so the (Tp, 3Hp) gi scratch stays in VMEM.


def out_proj_fused_kernel(h_ref, wo_ref, bo_ref, logp_ref):
    """Batched output projection + full log-softmax; W_out fully VMEM-resident."""
    logits = jnp.dot(h_ref[...].astype(jnp.bfloat16), wo_ref[...],
                     preferred_element_type=jnp.float32) + bo_ref[...]
    m = jnp.max(logits, axis=-1, keepdims=True)
    s = jnp.sum(jnp.exp(logits - m), axis=-1, keepdims=True)
    logp_ref[...] = logits - m - jnp.log(s)


def out_proj_tiled_kernel(h_ref, wo_ref, bo_ref, logits_ref, lse_ref, m_sc, l_sc):
    """Vocab-tiled projection (W_out streamed): writes raw logits + per-row logsumexp."""
    j = pl.program_id(1)

    @pl.when(j == 0)
    def _():
        m_sc[...] = jnp.full_like(m_sc, -jnp.inf)
        l_sc[...] = jnp.zeros_like(l_sc)

    logits = jnp.dot(h_ref[...].astype(jnp.bfloat16), wo_ref[...],
                     preferred_element_type=jnp.float32) + bo_ref[...]
    logits_ref[...] = logits

    m_prev = m_sc[...]
    m_new = jnp.maximum(m_prev, jnp.max(logits, axis=-1, keepdims=True))
    l_sc[...] = l_sc[...] * jnp.exp(m_prev - m_new) + \
        jnp.sum(jnp.exp(logits - m_new), axis=-1, keepdims=True)
    m_sc[...] = m_new

    @pl.when(j == pl.num_programs(1) - 1)
    def _():
        lse_ref[...] = m_sc[...] + jnp.log(l_sc[...])


def log_softmax_norm_kernel(logits_ref, lse_ref, logp_ref):
    """Second pass of the tiled log-softmax: logp = logits - logsumexp."""
    logp_ref[...] = logits_ref[...] - lse_ref[...]


# ----------------------------------------------------------------------------- wrappers
def decoder_gru_decode(tokens, hidden, params, *, max_wout_resident_bytes=None):
    """Teacher-forced multi-step decode (DecoderGRU.forward applied once per token).

    tokens: int32 [T]; hidden: f32 [1, 1, H].
    Returns (log_probs [T, V], final hidden [1, 1, H]).
    """
    H, V = params["hidden_size"], params["output_size"]
    Hp, Vp = params["Hp"], params["Vp"]
    T = int(tokens.shape[0])

    # Static padding / tiling decisions.
    t_tile = min(64, _round_up(T, 8))
    Tp = _round_up(T, t_tile)
    grid_t = Tp // t_tile
    vmem_limit = _vmem_limit_bytes()
    if max_wout_resident_bytes is None:
        max_wout_resident_bytes = vmem_limit // 4
    wout_bytes = Hp * Vp * 2                      # bf16
    resident = wout_bytes <= max_wout_resident_bytes

    # Host-side prep: embedding row gather (padded to Tp rows with token 0).
    tok_p = jnp.zeros((Tp,), jnp.int32).at[:T].set(tokens.astype(jnp.int32))
    x_p = jnp.take(params["embedding_p"], tok_p, axis=0)          # (Tp, Hp) f32
    h0 = jnp.zeros((1, Hp), jnp.float32).at[:, :H].set(hidden.reshape(1, H))

    # ------------------- pass 1: GRU recurrence (single kernel invocation) -------------
    rec_cost = pl.CostEstimate(
        flops=2 * Tp * Hp * 3 * Hp + 2 * T * Hp * 3 * Hp,
        transcendentals=3 * T * Hp,
        bytes_accessed=(Tp * Hp * 4                       # x
                        + 2 * Hp * 3 * Hp * 2             # W_i, W_h (bf16)
                        + 2 * 3 * Hp * 4 + Hp * 4         # biases + h0
                        + Tp * Hp * 4),                    # h_all out
    )
    h_all = pl.pallas_call(
        functools.partial(gru_recurrence_kernel, seq_len=T),
        out_shape=jax.ShapeDtypeStruct((Tp, Hp), jnp.float32),
        scratch_shapes=[pltpu.VMEM((Tp, 3 * Hp), jnp.float32)],
        compiler_params=pltpu.CompilerParams(vmem_limit_bytes=vmem_limit),
        cost_estimate=rec_cost,
    )(x_p, h0, params["w_i"], params["w_h"], params["b_i"], params["b_h"])

    # ------------------- pass 2: batched output projection + log-softmax ---------------
    proj_cost = pl.CostEstimate(
        flops=2 * Tp * Hp * Vp,
        transcendentals=Tp * Vp,
        bytes_accessed=Tp * Hp * 4 + Hp * Vp * 2 + Vp * 4 + Tp * Vp * 4,
    )

    if resident:
        # W_out fully VMEM-resident (typical for v5e/v6e); log-softmax fused in-kernel.
        logp_p = pl.pallas_call(
            out_proj_fused_kernel,
            grid=(grid_t,),
            in_specs=[
                pl.BlockSpec((t_tile, Hp), lambda i: (i, 0)),
                pl.BlockSpec((Hp, Vp), lambda i: (0, 0)),
                pl.BlockSpec((1, Vp), lambda i: (0, 0)),
            ],
            out_specs=pl.BlockSpec((t_tile, Vp), lambda i: (i, 0)),
            out_shape=jax.ShapeDtypeStruct((Tp, Vp), jnp.float32),
            compiler_params=pltpu.CompilerParams(
                dimension_semantics=("parallel",),
                vmem_limit_bytes=vmem_limit),
            cost_estimate=proj_cost,
        )(h_all, params["w_out"], params["b_out"])
    else:
        # Large vocab / small VMEM (v7x): stream W_out in (Hp, v_tile) lane tiles,
        # two-pass (online) log-softmax. T axis "parallel" → split across TensorCores.
        budget_cols = max(128, (max_wout_resident_bytes // (Hp * 2)) // 128 * 128)
        v_tile = min(Vp, budget_cols)
        while Vp % v_tile != 0:
            v_tile -= 128
        grid_v = Vp // v_tile

        logits_p, lse_p = pl.pallas_call(
            out_proj_tiled_kernel,
            grid=(grid_t, grid_v),
            in_specs=[
                pl.BlockSpec((t_tile, Hp), lambda i, j: (i, 0)),
                pl.BlockSpec((Hp, v_tile), lambda i, j: (0, j)),
                pl.BlockSpec((1, v_tile), lambda i, j: (0, j)),
            ],
            out_specs=(
                pl.BlockSpec((t_tile, v_tile), lambda i, j: (i, j)),
                pl.BlockSpec((t_tile, 1), lambda i, j: (i, 0)),
            ),
            out_shape=(
                jax.ShapeDtypeStruct((Tp, Vp), jnp.float32),
                jax.ShapeDtypeStruct((Tp, 1), jnp.float32),
            ),
            scratch_shapes=[pltpu.VMEM((t_tile, 1), jnp.float32),
                            pltpu.VMEM((t_tile, 1), jnp.float32)],
            compiler_params=pltpu.CompilerParams(
                dimension_semantics=("parallel", "arbitrary"),
                vmem_limit_bytes=vmem_limit),
            cost_estimate=proj_cost,
        )(h_all, params["w_out"], params["b_out"])

        logp_p = pl.pallas_call(
            log_softmax_norm_kernel,
            grid=(grid_t, grid_v),
            in_specs=[
                pl.BlockSpec((t_tile, v_tile), lambda i, j: (i, j)),
                pl.BlockSpec((t_tile, 1), lambda i, j: (i, 0)),
            ],
            out_specs=pl.BlockSpec((t_tile, v_tile), lambda i, j: (i, j)),
            out_shape=jax.ShapeDtypeStruct((Tp, Vp), jnp.float32),
            compiler_params=pltpu.CompilerParams(
                dimension_semantics=("parallel", "parallel"),
                vmem_limit_bytes=vmem_limit),
        )(logits_p, lse_p)

    log_probs = logp_p[:T, :V]
    h_final = h_all[T - 1, :H].reshape(1, 1, H)
    return log_probs, h_final


def decoder_gru_forward(token, hidden, params):
    """Exact analogue of DecoderGRU.forward(input, hidden): single decode step."""
    log_probs, h_new = decoder_gru_decode(
        jnp.reshape(token, (1,)).astype(jnp.int32), hidden, params)
    return log_probs, h_new                     # ([1, V], [1, 1, H])


# ----------------------------------------------------------------------------- params
def init_params(key, hidden_size, output_size):
    H, V = hidden_size, output_size
    Hp, Vp = _round_up(H, 128), _round_up(V, 128)
    ks = jax.random.split(key, 7)
    scale = 0.1
    emb = jax.random.normal(ks[0], (V, H), jnp.float32) * scale
    w_ih = jax.random.normal(ks[1], (3 * H, H), jnp.float32) * scale   # PyTorch GRU [r|z|n]
    w_hh = jax.random.normal(ks[2], (3 * H, H), jnp.float32) * scale
    b_ih = jax.random.normal(ks[3], (3 * H,), jnp.float32) * scale
    b_hh = jax.random.normal(ks[4], (3 * H,), jnp.float32) * scale
    w_out = jax.random.normal(ks[5], (V, H), jnp.float32) * scale      # PyTorch Linear (out,in)
    b_out = jax.random.normal(ks[6], (V,), jnp.float32) * scale

    def fuse_gates(w):   # (3H, H) torch layout -> (Hp, 3Hp) [r|z|n] lane-packed, bf16
        out = jnp.zeros((Hp, 3 * Hp), jnp.float32)
        for g in range(3):
            blk = jnp.transpose(w[g * H:(g + 1) * H, :])               # (H_in, H_out)
            out = out.at[:H, g * Hp:g * Hp + H].set(blk)
        return out.astype(jnp.bfloat16)

    def fuse_bias(b):
        out = jnp.zeros((1, 3 * Hp), jnp.float32)
        for g in range(3):
            out = out.at[0, g * Hp:g * Hp + H].set(b[g * H:(g + 1) * H])
        return out

    emb_p = jnp.zeros((V, Hp), jnp.float32).at[:, :H].set(emb)
    w_out_p = (jnp.zeros((Hp, Vp), jnp.float32)
               .at[:H, :V].set(jnp.transpose(w_out)).astype(jnp.bfloat16))
    # Padded vocab lanes get a large negative f32 bias so they vanish from the softmax.
    # (Keep this value dtype-aware: -1e30 is only safe because logits stay f32.)
    b_out_p = jnp.full((1, Vp), -1e30, jnp.float32).at[0, :V].set(b_out)

    return {
        "hidden_size": H, "output_size": V, "Hp": Hp, "Vp": Vp,
        # raw PyTorch-layout parameters (used by the pure-JAX reference)
        "raw": {"embedding": emb, "w_ih": w_ih, "w_hh": w_hh,
                "b_ih": b_ih, "b_hh": b_hh, "w_out": w_out, "b_out": b_out},
        # kernel-ready packed / padded parameters
        "embedding_p": emb_p,
        "w_i": fuse_gates(w_ih), "w_h": fuse_gates(w_hh),
        "b_i": fuse_bias(b_ih), "b_h": fuse_bias(b_hh),
        "w_out": w_out_p, "b_out": b_out_p,
    }


# ----------------------------------------------------------------------------- reference
def reference_step(token, h, raw, H):
    """Pure-JAX mirror of DecoderGRU.forward for one step (same bf16 weight precision)."""
    x = jnp.maximum(raw["embedding"][token].reshape(1, H), 0.0)

    def gate_w(w, g):
        return jnp.transpose(w[g * H:(g + 1) * H, :]).astype(jnp.bfloat16)

    def gate_b(b, g):
        return b[g * H:(g + 1) * H].reshape(1, H)

    def mm(a, w):
        return jnp.dot(a.astype(jnp.bfloat16), w, preferred_element_type=jnp.float32)

    r = jax.nn.sigmoid(mm(x, gate_w(raw["w_ih"], 0)) + gate_b(raw["b_ih"], 0)
                       + mm(h, gate_w(raw["w_hh"], 0)) + gate_b(raw["b_hh"], 0))
    z = jax.nn.sigmoid(mm(x, gate_w(raw["w_ih"], 1)) + gate_b(raw["b_ih"], 1)
                       + mm(h, gate_w(raw["w_hh"], 1)) + gate_b(raw["b_hh"], 1))
    n = jnp.tanh(mm(x, gate_w(raw["w_ih"], 2)) + gate_b(raw["b_ih"], 2)
                 + r * (mm(h, gate_w(raw["w_hh"], 2)) + gate_b(raw["b_hh"], 2)))
    h_new = (1.0 - z) * n + z * h
    logits = mm(h_new, jnp.transpose(raw["w_out"]).astype(jnp.bfloat16)) \
        + raw["b_out"].reshape(1, -1)
    return jax.nn.log_softmax(logits, axis=1), h_new


def reference_decode(tokens, hidden, params):
    H = params["hidden_size"]
    lps, h = [], hidden.reshape(1, H)
    for t in range(int(tokens.shape[0])):
        lp, h = reference_step(tokens[t], h, params["raw"], H)
        lps.append(lp)
    return jnp.concatenate(lps, axis=0), h


# ----------------------------------------------------------------------------- main
if __name__ == "__main__":
    key = jax.random.PRNGKey(0)
    k_param, k_tok, k_hid, k_param2, k_tok2, k_hid2 = jax.random.split(key, 6)

    # ---- config A: small shapes, W_out resident, fused log-softmax ----
    hidden_size, output_size, seq_len = 32, 64, 8
    params = init_params(k_param, hidden_size, output_size)
    tokens = jax.random.randint(k_tok, (seq_len,), 0, output_size, dtype=jnp.int32)
    hidden = jax.random.normal(k_hid, (1, 1, hidden_size), jnp.float32) * 0.1

    log_probs_seq, h_final = decoder_gru_decode(tokens, hidden, params)
    jax.block_until_ready((log_probs_seq, h_final))

    log_probs_1, h_1 = decoder_gru_forward(tokens[0], hidden, params)
    jax.block_until_ready((log_probs_1, h_1))

    ref_lp, ref_h = reference_decode(tokens, hidden, params)
    assert log_probs_seq.shape == (seq_len, output_size)
    assert h_final.shape == (1, 1, hidden_size)
    assert log_probs_1.shape == (1, output_size)
    assert h_1.shape == (1, 1, hidden_size)
    assert jnp.allclose(log_probs_seq, ref_lp, atol=2e-3, rtol=2e-3), \
        float(jnp.max(jnp.abs(log_probs_seq - ref_lp)))
    assert jnp.allclose(h_final.reshape(1, hidden_size), ref_h, atol=2e-3, rtol=2e-3)
    assert jnp.allclose(log_probs_1, ref_lp[0:1], atol=2e-3, rtol=2e-3)

    # ---- config B: force the vocab-tiled (streamed W_out) path, as used for big-vocab v7x ----
    hidden_b_size, output_b_size, seq_b_len = 32, 200, 6   # Vp=256 -> 2 vocab tiles of 128
    params_b = init_params(k_param2, hidden_b_size, output_b_size)
    tokens_b = jax.random.randint(k_tok2, (seq_b_len,), 0, output_b_size, dtype=jnp.int32)
    hidden_b = jax.random.normal(k_hid2, (1, 1, hidden_b_size), jnp.float32) * 0.1

    log_probs_b, h_final_b = decoder_gru_decode(
        tokens_b, hidden_b, params_b, max_wout_resident_bytes=0)
    jax.block_until_ready((log_probs_b, h_final_b))

    ref_lp_b, ref_h_b = reference_decode(tokens_b, hidden_b, params_b)
    assert log_probs_b.shape == (seq_b_len, output_b_size)
    assert jnp.allclose(log_probs_b, ref_lp_b, atol=2e-3, rtol=2e-3), \
        float(jnp.max(jnp.abs(log_probs_b - ref_lp_b)))
    assert jnp.allclose(h_final_b.reshape(1, hidden_b_size), ref_h_b, atol=2e-3, rtol=2e-3)

    print("KERNEL_OK")
</pallas_src>

<mosaic_0001>
module attributes {stable_mosaic.version = 11 : i64} {
  func.func @gru_recurrence_kernel(%arg0: memref<8x128xf32, #tpu.memory_space<vmem>>, %arg1: memref<1x128xf32, #tpu.memory_space<vmem>>, %arg2: memref<128x384xbf16, #tpu.memory_space<vmem>>, %arg3: memref<128x384xbf16, #tpu.memory_space<vmem>>, %arg4: memref<1x384xf32, #tpu.memory_space<vmem>>, %arg5: memref<1x384xf32, #tpu.memory_space<vmem>>, %arg6: memref<8x128xf32, #tpu.memory_space<vmem>>, %arg7: memref<8x384xf32, #tpu.memory_space<vmem>>) attributes {dimension_semantics = [], scalar_prefetch = 0 : i64, scratch_operands = 1 : i64, tpu.core_type = #tpu.core_type<tc>} {
    %c0 = arith.constant 0 : index
    %c0_0 = arith.constant 0 : index
    %0 = vector.load %arg0[%c0, %c0_0] : memref<8x128xf32, #tpu.memory_space<vmem>>, vector<8x128xf32>
    %cst = arith.constant 0.000000e+00 : f32
    %1 = vector.broadcast %cst : f32 to vector<8x128xf32>
    %2 = arith.maximumf %0, %1 : vector<8x128xf32>
    %3 = arith.truncf %2 : vector<8x128xf32> to vector<8x128xbf16>
    %c0_1 = arith.constant 0 : index
    %c0_2 = arith.constant 0 : index
    %4 = vector.load %arg2[%c0_1, %c0_2] : memref<128x384xbf16, #tpu.memory_space<vmem>>, vector<128x384xbf16>
    %cst_3 = arith.constant dense<0.000000e+00> : vector<8x384xf32>
    %5 = tpu.matmul %3, %4, %cst_3 {dimension_numbers = #tpu.dot_dimension_numbers<[1], [0], [0], [1], [0, 0, 1, 1], [], []>} : vector<8x128xbf16>, vector<128x384xbf16>, vector<8x384xf32> -> vector<8x384xf32>
    %c0_4 = arith.constant 0 : index
    %c0_5 = arith.constant 0 : index
    %6 = vector.load %arg4[%c0_4, %c0_5] : memref<1x384xf32, #tpu.memory_space<vmem>>, vector<1x384xf32>
    %7 = vector.broadcast %6 : vector<1x384xf32> to vector<8x384xf32>
    %8 = arith.addf %5, %7 : vector<8x384xf32>
    %c0_6 = arith.constant 0 : index
    %c0_7 = arith.constant 0 : index
    %9 = vector.load %arg7[%c0_6, %c0_7] : memref<8x384xf32, #tpu.memory_space<vmem>>, vector<8x384xf32>
    tpu.vector_store %arg7[%c0_6, %c0_7], %8 {strides = array<i32>} : memref<8x384xf32, #tpu.memory_space<vmem>>, vector<8x384xf32>,
    %cst_8 = arith.constant 0.000000e+00 : f32
    %10 = vector.broadcast %cst_8 : f32 to vector<8x128xf32>
    %c0_9 = arith.constant 0 : index
    %c0_10 = arith.constant 0 : index
    %11 = vector.load %arg6[%c0_9, %c0_10] : memref<8x128xf32, #tpu.memory_space<vmem>>, vector<8x128xf32>
    tpu.vector_store %arg6[%c0_9, %c0_10], %10 {strides = array<i32>} : memref<8x128xf32, #tpu.memory_space<vmem>>, vector<8x128xf32>,
    %c0_11 = arith.constant 0 : index
    %c0_12 = arith.constant 0 : index
    %12 = vector.load %arg3[%c0_11, %c0_12] : memref<128x384xbf16, #tpu.memory_space<vmem>>, vector<128x384xbf16>
    %c0_13 = arith.constant 0 : index
    %c0_14 = arith.constant 0 : index
    %13 = vector.load %arg5[%c0_13, %c0_14] : memref<1x384xf32, #tpu.memory_space<vmem>>, vector<1x384xf32>
    %c0_15 = arith.constant 0 : index
    %c0_16 = arith.constant 0 : index
    %14 = vector.load %arg1[%c0_15, %c0_16] : memref<1x128xf32, #tpu.memory_space<vmem>>, vector<1x128xf32>
    %c0_i32 = arith.constant 0 : i32
    %15 = arith.index_cast %c0_i32 : i32 to index
    %c0_17 = arith.constant 0 : index
    %16 = vector.load %arg7[%15, %c0_17] : memref<8x384xf32, #tpu.memory_space<vmem>>, vector<1x384xf32>
    %17 = arith.truncf %14 : vector<1x128xf32> to vector<1x128xbf16>
    %cst_18 = arith.constant dense<0.000000e+00> : vector<1x384xf32>
    %18 = tpu.matmul %17, %12, %cst_18 {dimension_numbers = #tpu.dot_dimension_numbers<[1], [0], [0], [1], [0, 0, 1, 1], [], []>} : vector<1x128xbf16>, vector<128x384xbf16>, vector<1x384xf32> -> vector<1x384xf32>
    %19 = arith.addf %18, %13 : vector<1x384xf32>
    %20 = vector.extract_strided_slice %16 {offsets = [0, 0], sizes = [1, 128], strides = [1, 1]} : vector<1x384xf32> to vector<1x128xf32>
    %21 = vector.extract_strided_slice %19 {offsets = [0, 0], sizes = [1, 128], strides = [1, 1]} : vector<1x384xf32> to vector<1x128xf32>
    %22 = arith.addf %20, %21 : vector<1x128xf32>
    %23 = arith.negf %22 : vector<1x128xf32>
    %24 = math.exp %23 : vector<1x128xf32>
    %cst_19 = arith.constant 1.000000e+00 : f32
    %25 = vector.broadcast %cst_19 : f32 to vector<1x128xf32>
    %26 = arith.addf %25, %24 : vector<1x128xf32>
    %27 = arith.divf %25, %26 : vector<1x128xf32>
    %28 = vector.extract_strided_slice %16 {offsets = [0, 128], sizes = [1, 128], strides = [1, 1]} : vector<1x384xf32> to vector<1x128xf32>
    %29 = vector.extract_strided_slice %19 {offsets = [0, 128], sizes = [1, 128], strides = [1, 1]} : vector<1x384xf32> to vector<1x128xf32>
    %30 = arith.addf %28, %29 : vector<1x128xf32>
    %31 = arith.negf %30 : vector<1x128xf32>
    %32 = math.exp %31 : vector<1x128xf32>
    %cst_20 = arith.constant 1.000000e+00 : f32
    %33 = vector.broadcast %cst_20 : f32 to vector<1x128xf32>
    %34 = arith.addf %33, %32 : vector<1x128xf32>
    %35 = arith.divf %33, %34 : vector<1x128xf32>
    %36 = vector.extract_strided_slice %16 {offsets = [0, 256], sizes = [1, 128], strides = [1, 1]} : vector<1x384xf32> to vector<1x128xf32>
    %37 = vector.extract_strided_slice %19 {offsets = [0, 256], sizes = [1, 128], strides = [1, 1]} : vector<1x384xf32> to vector<1x128xf32>
    %38 = arith.mulf %27, %37 : vector<1x128xf32>
    %39 = arith.addf %36, %38 : vector<1x128xf32>
    %40 = math.tanh %39 : vector<1x128xf32>
    %cst_21 = arith.constant 1.000000e+00 : f32
    %41 = vector.broadcast %cst_21 : f32 to vector<1x128xf32>
    %42 = arith.subf %41, %35 : vector<1x128xf32>
    %43 = arith.mulf %42, %40 : vector<1x128xf32>
    %44 = arith.mulf %35, %14 : vector<1x128xf32>
    %45 = arith.addf %43, %44 : vector<1x128xf32>
    %46 = arith.index_cast %c0_i32 : i32 to index
    %c0_22 = arith.constant 0 : index
    %47 = vector.load %arg6[%46, %c0_22] : memref<8x128xf32, #tpu.memory_space<vmem>>, vector<1x128xf32>
    tpu.vector_store %arg6[%46, %c0_22], %45 {strides = array<i32>} : memref<8x128xf32, #tpu.memory_space<vmem>>, vector<1x128xf32>,
    %c1_i32 = arith.constant 1 : i32
    %48 = arith.index_cast %c1_i32 : i32 to index
    %c0_23 = arith.constant 0 : index
    %49 = vector.load %arg7[%48, %c0_23] : memref<8x384xf32, #tpu.memory_space<vmem>>, vector<1x384xf32>
    %50 = arith.truncf %45 : vector<1x128xf32> to vector<1x128xbf16>
    %cst_24 = arith.constant dense<0.000000e+00> : vector<1x384xf32>
    %51 = tpu.matmul %50, %12, %cst_24 {dimension_numbers = #tpu.dot_dimension_numbers<[1], [0], [0], [1], [0, 0, 1, 1], [], []>} : vector<1x128xbf16>, vector<128x384xbf16>, vector<1x384xf32> -> vector<1x384xf32>
    %52 = arith.addf %51, %13 : vector<1x384xf32>
    %53 = vector.extract_strided_slice %49 {offsets = [0, 0], sizes = [1, 128], strides = [1, 1]} : vector<1x384xf32> to vector<1x128xf32>
    %54 = vector.extract_strided_slice %52 {offsets = [0, 0], sizes = [1, 128], strides = [1, 1]} : vector<1x384xf32> to vector<1x128xf32>
    %55 = arith.addf %53, %54 : vector<1x128xf32>
    %56 = arith.negf %55 : vector<1x128xf32>
    %57 = math.exp %56 : vector<1x128xf32>
    %cst_25 = arith.constant 1.000000e+00 : f32
    %58 = vector.broadcast %cst_25 : f32 to vector<1x128xf32>
    %59 = arith.addf %58, %57 : vector<1x128xf32>
    %60 = arith.divf %58, %59 : vector<1x128xf32>
    %61 = vector.extract_strided_slice %49 {offsets = [0, 128], sizes = [1, 128], strides = [1, 1]} : vector<1x384xf32> to vector<1x128xf32>
    %62 = vector.extract_strided_slice %52 {offsets = [0, 128], sizes = [1, 128], strides = [1, 1]} : vector<1x384xf32> to vector<1x128xf32>
    %63 = arith.addf %61, %62 : vector<1x128xf32>
    %64 = arith.negf %63 : vector<1x128xf32>
    %65 = math.exp %64 : vector<1x128xf32>
    %cst_26 = arith.constant 1.000000e+00 : f32
    %66 = vector.broadcast %cst_26 : f32 to vector<1x128xf32>
    %67 = arith.addf %66, %65 : vector<1x128xf32>
    %68 = arith.divf %66, %67 : vector<1x128xf32>
    %69 = vector.extract_strided_slice %49 {offsets = [0, 256], sizes = [1, 128], strides = [1, 1]} : vector<1x384xf32> to vector<1x128xf32>
    %70 = vector.extract_strided_slice %52 {offsets = [0, 256], sizes = [1, 128], strides = [1, 1]} : vector<1x384xf32> to vector<1x128xf32>
    %71 = arith.mulf %60, %70 : vector<1x128xf32>
    %72 = arith.addf %69, %71 : vector<1x128xf32>
    %73 = math.tanh %72 : vector<1x128xf32>
    %cst_27 = arith.constant 1.000000e+00 : f32
    %74 = vector.broadcast %cst_27 : f32 to vector<1x128xf32>
    %75 = arith.subf %74, %68 : vector<1x128xf32>
    %76 = arith.mulf %75, %73 : vector<1x128xf32>
    %77 = arith.mulf %68, %45 : vector<1x128xf32>
    %78 = arith.addf %76, %77 : vector<1x128xf32>
    %79 = arith.index_cast %c1_i32 : i32 to index
    %c0_28 = arith.constant 0 : index
    %80 = vector.load %arg6[%79, %c0_28] : memref<8x128xf32, #tpu.memory_space<vmem>>, vector<1x128xf32>
    tpu.vector_store %arg6[%79, %c0_28], %78 {strides = array<i32>} : memref<8x128xf32, #tpu.memory_space<vmem>>, vector<1x128xf32>,
    %c2_i32 = arith.constant 2 : i32
    %81 = arith.index_cast %c2_i32 : i32 to index
    %c0_29 = arith.constant 0 : index
    %82 = vector.load %arg7[%81, %c0_29] : memref<8x384xf32, #tpu.memory_space<vmem>>, vector<1x384xf32>
    %83 = arith.truncf %78 : vector<1x128xf32> to vector<1x128xbf16>
    %cst_30 = arith.constant dense<0.000000e+00> : vector<1x384xf32>
    %84 = tpu.matmul %83, %12, %cst_30 {dimension_numbers = #tpu.dot_dimension_numbers<[1], [0], [0], [1], [0, 0, 1, 1], [], []>} : vector<1x128xbf16>, vector<128x384xbf16>, vector<1x384xf32> -> vector<1x384xf32>
    %85 = arith.addf %84, %13 : vector<1x384xf32>
    %86 = vector.extract_strided_slice %82 {offsets = [0, 0], sizes = [1, 128], strides = [1, 1]} : vector<1x384xf32> to vector<1x128xf32>
    %87 = vector.extract_strided_slice %85 {offsets = [0, 0], sizes = [1, 128], strides = [1, 1]} : vector<1x384xf32> to vector<1x128xf32>
    %88 = arith.addf %86, %87 : vector<1x128xf32>
    %89 = arith.negf %88 : vector<1x128xf32>
    %90 = math.exp %89 : vector<1x128xf32>
    %cst_31 = arith.constant 1.000000e+00 : f32
    %91 = vector.broadcast %cst_31 : f32 to vector<1x128xf32>
    %92 = arith.addf %91, %90 : vector<1x128xf32>
    %93 = arith.divf %91, %92 : vector<1x128xf32>
    %94 = vector.extract_strided_slice %82 {offsets = [0, 128], sizes = [1, 128], strides = [1, 1]} : vector<1x384xf32> to vector<1x128xf32>
    %95 = vector.extract_strided_slice %85 {offsets = [0, 128], sizes = [1, 128], strides = [1, 1]} : vector<1x384xf32> to vector<1x128xf32>
    %96 = arith.addf %94, %95 : vector<1x128xf32>
    %97 = arith.negf %96 : vector<1x128xf32>
    %98 = math.exp %97 : vector<1x128xf32>
    %cst_32 = arith.constant 1.000000e+00 : f32
    %99 = vector.broadcast %cst_32 : f32 to vector<1x128xf32>
    %100 = arith.addf %99, %98 : vector<1x128xf32>
    %101 = arith.divf %99, %100 : vector<1x128xf32>
    %102 = vector.extract_strided_slice %82 {offsets = [0, 256], sizes = [1, 128], strides = [1, 1]} : vector<1x384xf32> to vector<1x128xf32>
    %103 = vector.extract_strided_slice %85 {offsets = [0, 256], sizes = [1, 128], strides = [1, 1]} : vector<1x384xf32> to vector<1x128xf32>
    %104 = arith.mulf %93, %103 : vector<1x128xf32>
    %105 = arith.addf %102, %104 : vector<1x128xf32>
    %106 = math.tanh %105 : vector<1x128xf32>
    %cst_33 = arith.constant 1.000000e+00 : f32
    %107 = vector.broadcast %cst_33 : f32 to vector<1x128xf32>
    %108 = arith.subf %107, %101 : vector<1x128xf32>
    %109 = arith.mulf %108, %106 : vector<1x128xf32>
    %110 = arith.mulf %101, %78 : vector<1x128xf32>
    %111 = arith.addf %109, %110 : vector<1x128xf32>
    %112 = arith.index_cast %c2_i32 : i32 to index
    %c0_34 = arith.constant 0 : index
    %113 = vector.load %arg6[%112, %c0_34] : memref<8x128xf32, #tpu.memory_space<vmem>>, vector<1x128xf32>
    tpu.vector_store %arg6[%112, %c0_34], %111 {strides = array<i32>} : memref<8x128xf32, #tpu.memory_space<vmem>>, vector<1x128xf32>,
    %c3_i32 = arith.constant 3 : i32
    %114 = arith.index_cast %c3_i32 : i32 to index
    %c0_35 = arith.constant 0 : index
    %115 = vector.load %arg7[%114, %c0_35] : memref<8x384xf32, #tpu.memory_space<vmem>>, vector<1x384xf32>
    %116 = arith.truncf %111 : vector<1x128xf32> to vector<1x128xbf16>
    %cst_36 = arith.constant dense<0.000000e+00> : vector<1x384xf32>
    %117 = tpu.matmul %116, %12, %cst_36 {dimension_numbers = #tpu.dot_dimension_numbers<[1], [0], [0], [1], [0, 0, 1, 1], [], []>} : vector<1x128xbf16>, vector<128x384xbf16>, vector<1x384xf32> -> vector<1x384xf32>
    %118 = arith.addf %117, %13 : vector<1x384xf32>
    %119 = vector.extract_strided_slice %115 {offsets = [0, 0], sizes = [1, 128], strides = [1, 1]} : vector<1x384xf32> to vector<1x128xf32>
    %120 = vector.extract_strided_slice %118 {offsets = [0, 0], sizes = [1, 128], strides = [1, 1]} : vector<1x384xf32> to vector<1x128xf32>
    %121 = arith.addf %119, %120 : vector<1x128xf32>
    %122 = arith.negf %121 : vector<1x128xf32>
    %123 = math.exp %122 : vector<1x128xf32>
    %cst_37 = arith.constant 1.000000e+00 : f32
    %124 = vector.broadcast %cst_37 : f32 to vector<1x128xf32>
    %125 = arith.addf %124, %123 : vector<1x128xf32>
    %126 = arith.divf %124, %125 : vector<1x128xf32>
    %127 = vector.extract_strided_slice %115 {offsets = [0, 128], sizes = [1, 128], strides = [1, 1]} : vector<1x384xf32> to vector<1x128xf32>
    %128 = vector.extract_strided_slice %118 {offsets = [0, 128], sizes = [1, 128], strides = [1, 1]} : vector<1x384xf32> to vector<1x128xf32>
    %129 = arith.addf %127, %128 : vector<1x128xf32>
    %130 = arith.negf %129 : vector<1x128xf32>
    %131 = math.exp %130 : vector<1x128xf32>
    %cst_38 = arith.constant 1.000000e+00 : f32
    %132 = vector.broadcast %cst_38 : f32 to vector<1x128xf32>
    %133 = arith.addf %132, %131 : vector<1x128xf32>
    %134 = arith.divf %132, %133 : vector<1x128xf32>
    %135 = vector.extract_strided_slice %115 {offsets = [0, 256], sizes = [1, 128], strides = [1, 1]} : vector<1x384xf32> to vector<1x128xf32>
    %136 = vector.extract_strided_slice %118 {offsets = [0, 256], sizes = [1, 128], strides = [1, 1]} : vector<1x384xf32> to vector<1x128xf32>
    %137 = arith.mulf %126, %136 : vector<1x128xf32>
    %138 = arith.addf %135, %137 : vector<1x128xf32>
    %139 = math.tanh %138 : vector<1x128xf32>
    %cst_39 = arith.constant 1.000000e+00 : f32
    %140 = vector.broadcast %cst_39 : f32 to vector<1x128xf32>
    %141 = arith.subf %140, %134 : vector<1x128xf32>
    %142 = arith.mulf %141, %139 : vector<1x128xf32>
    %143 = arith.mulf %134, %111 : vector<1x128xf32>
    %144 = arith.addf %142, %143 : vector<1x128xf32>
    %145 = arith.index_cast %c3_i32 : i32 to index
    %c0_40 = arith.constant 0 : index
    %146 = vector.load %arg6[%145, %c0_40] : memref<8x128xf32, #tpu.memory_space<vmem>>, vector<1x128xf32>
    tpu.vector_store %arg6[%145, %c0_40], %144 {strides = array<i32>} : memref<8x128xf32, #tpu.memory_space<vmem>>, vector<1x128xf32>,
    %c4_i32 = arith.constant 4 : i32
    %147 = arith.index_cast %c4_i32 : i32 to index
    %c0_41 = arith.constant 0 : index
    %148 = vector.load %arg7[%147, %c0_41] : memref<8x384xf32, #tpu.memory_space<vmem>>, vector<1x384xf32>
    %149 = arith.truncf %144 : vector<1x128xf32> to vector<1x128xbf16>
    %cst_42 = arith.constant dense<0.000000e+00> : vector<1x384xf32>
    %150 = tpu.matmul %149, %12, %cst_42 {dimension_numbers = #tpu.dot_dimension_numbers<[1], [0], [0], [1], [0, 0, 1, 1], [], []>} : vector<1x128xbf16>, vector<128x384xbf16>, vector<1x384xf32> -> vector<1x384xf32>
    %151 = arith.addf %150, %13 : vector<1x384xf32>
    %152 = vector.extract_strided_slice %148 {offsets = [0, 0], sizes = [1, 128], strides = [1, 1]} : vector<1x384xf32> to vector<1x128xf32>
    %153 = vector.extract_strided_slice %151 {offsets = [0, 0], sizes = [1, 128], strides = [1, 1]} : vector<1x384xf32> to vector<1x128xf32>
    %154 = arith.addf %152, %153 : vector<1x128xf32>
    %155 = arith.negf %154 : vector<1x128xf32>
    %156 = math.exp %155 : vector<1x128xf32>
    %cst_43 = arith.constant 1.000000e+00 : f32
    %157 = vector.broadcast %cst_43 : f32 to vector<1x128xf32>
    %158 = arith.addf %157, %156 : vector<1x128xf32>
    %159 = arith.divf %157, %158 : vector<1x128xf32>
    %160 = vector.extract_strided_slice %148 {offsets = [0, 128], sizes = [1, 128], strides = [1, 1]} : vector<1x384xf32> to vector<1x128xf32>
    %161 = vector.extract_strided_slice %151 {offsets = [0, 128], sizes = [1, 128], strides = [1, 1]} : vector<1x384xf32> to vector<1x128xf32>
    %162 = arith.addf %160, %161 : vector<1x128xf32>
    %163 = arith.negf %162 : vector<1x128xf32>
    %164 = math.exp %163 : vector<1x128xf32>
    %cst_44 = arith.constant 1.000000e+00 : f32
    %165 = vector.broadcast %cst_44 : f32 to vector<1x128xf32>
    %166 = arith.addf %165, %164 : vector<1x128xf32>
    %167 = arith.divf %165, %166 : vector<1x128xf32>
    %168 = vector.extract_strided_slice %148 {offsets = [0, 256], sizes = [1, 128], strides = [1, 1]} : vector<1x384xf32> to vector<1x128xf32>
    %169 = vector.extract_strided_slice %151 {offsets = [0, 256], sizes = [1, 128], strides = [1, 1]} : vector<1x384xf32> to vector<1x128xf32>
    %170 = arith.mulf %159, %169 : vector<1x128xf32>
    %171 = arith.addf %168, %170 : vector<1x128xf32>
    %172 = math.tanh %171 : vector<1x128xf32>
    %cst_45 = arith.constant 1.000000e+00 : f32
    %173 = vector.broadcast %cst_45 : f32 to vector<1x128xf32>
    %174 = arith.subf %173, %167 : vector<1x128xf32>
    %175 = arith.mulf %174, %172 : vector<1x128xf32>
    %176 = arith.mulf %167, %144 : vector<1x128xf32>
    %177 = arith.addf %175, %176 : vector<1x128xf32>
    %178 = arith.index_cast %c4_i32 : i32 to index
    %c0_46 = arith.constant 0 : index
    %179 = vector.load %arg6[%178, %c0_46] : memref<8x128xf32, #tpu.memory_space<vmem>>, vector<1x128xf32>
    tpu.vector_store %arg6[%178, %c0_46], %177 {strides = array<i32>} : memref<8x128xf32, #tpu.memory_space<vmem>>, vector<1x128xf32>,
    %c5_i32 = arith.constant 5 : i32
    %180 = arith.index_cast %c5_i32 : i32 to index
    %c0_47 = arith.constant 0 : index
    %181 = vector.load %arg7[%180, %c0_47] : memref<8x384xf32, #tpu.memory_space<vmem>>, vector<1x384xf32>
    %182 = arith.truncf %177 : vector<1x128xf32> to vector<1x128xbf16>
    %cst_48 = arith.constant dense<0.000000e+00> : vector<1x384xf32>
    %183 = tpu.matmul %182, %12, %cst_48 {dimension_numbers = #tpu.dot_dimension_numbers<[1], [0], [0], [1], [0, 0, 1, 1], [], []>} : vector<1x128xbf16>, vector<128x384xbf16>, vector<1x384xf32> -> vector<1x384xf32>
    %184 = arith.addf %183, %13 : vector<1x384xf32>
    %185 = vector.extract_strided_slice %181 {offsets = [0, 0], sizes = [1, 128], strides = [1, 1]} : vector<1x384xf32> to vector<1x128xf32>
    %186 = vector.extract_strided_slice %184 {offsets = [0, 0], sizes = [1, 128], strides = [1, 1]} : vector<1x384xf32> to vector<1x128xf32>
    %187 = arith.addf %185, %186 : vector<1x128xf32>
    %188 = arith.negf %187 : vector<1x128xf32>
    %189 = math.exp %188 : vector<1x128xf32>
    %cst_49 = arith.constant 1.000000e+00 : f32
    %190 = vector.broadcast %cst_49 : f32 to vector<1x128xf32>
    %191 = arith.addf %190, %189 : vector<1x128xf32>
    %192 = arith.divf %190, %191 : vector<1x128xf32>
    %193 = vector.extract_strided_slice %181 {offsets = [0, 128], sizes = [1, 128], strides = [1, 1]} : vector<1x384xf32> to vector<1x128xf32>
    %194 = vector.extract_strided_slice %184 {offsets = [0, 128], sizes = [1, 128], strides = [1, 1]} : vector<1x384xf32> to vector<1x128xf32>
    %195 = arith.addf %193, %194 : vector<1x128xf32>
    %196 = arith.negf %195 : vector<1x128xf32>
    %197 = math.exp %196 : vector<1x128xf32>
    %cst_50 = arith.constant 1.000000e+00 : f32
    %198 = vector.broadcast %cst_50 : f32 to vector<1x128xf32>
    %199 = arith.addf %198, %197 : vector<1x128xf32>
    %200 = arith.divf %198, %199 : vector<1x128xf32>
    %201 = vector.extract_strided_slice %181 {offsets = [0, 256], sizes = [1, 128], strides = [1, 1]} : vector<1x384xf32> to vector<1x128xf32>
    %202 = vector.extract_strided_slice %184 {offsets = [0, 256], sizes = [1, 128], strides = [1, 1]} : vector<1x384xf32> to vector<1x128xf32>
    %203 = arith.mulf %192, %202 : vector<1x128xf32>
    %204 = arith.addf %201, %203 : vector<1x128xf32>
    %205 = math.tanh %204 : vector<1x128xf32>
    %cst_51 = arith.constant 1.000000e+00 : f32
    %206 = vector.broadcast %cst_51 : f32 to vector<1x128xf32>
    %207 = arith.subf %206, %200 : vector<1x128xf32>
    %208 = arith.mulf %207, %205 : vector<1x128xf32>
    %209 = arith.mulf %200, %177 : vector<1x128xf32>
    %210 = arith.addf %208, %209 : vector<1x128xf32>
    %211 = arith.index_cast %c5_i32 : i32 to index
    %c0_52 = arith.constant 0 : index
    %212 = vector.load %arg6[%211, %c0_52] : memref<8x128xf32, #tpu.memory_space<vmem>>, vector<1x128xf32>
    tpu.vector_store %arg6[%211, %c0_52], %210 {strides = array<i32>} : memref<8x128xf32, #tpu.memory_space<vmem>>, vector<1x128xf32>,
    %c6_i32 = arith.constant 6 : i32
    %213 = arith.index_cast %c6_i32 : i32 to index
    %c0_53 = arith.constant 0 : index
    %214 = vector.load %arg7[%213, %c0_53] : memref<8x384xf32, #tpu.memory_space<vmem>>, vector<1x384xf32>
    %215 = arith.truncf %210 : vector<1x128xf32> to vector<1x128xbf16>
    %cst_54 = arith.constant dense<0.000000e+00> : vector<1x384xf32>
    %216 = tpu.matmul %215, %12, %cst_54 {dimension_numbers = #tpu.dot_dimension_numbers<[1], [0], [0], [1], [0, 0, 1, 1], [], []>} : vector<1x128xbf16>, vector<128x384xbf16>, vector<1x384xf32> -> vector<1x384xf32>
    %217 = arith.addf %216, %13 : vector<1x384xf32>
    %218 = vector.extract_strided_slice %214 {offsets = [0, 0], sizes = [1, 128], strides = [1, 1]} : vector<1x384xf32> to vector<1x128xf32>
    %219 = vector.extract_strided_slice %217 {offsets = [0, 0], sizes = [1, 128], strides = [1, 1]} : vector<1x384xf32> to vector<1x128xf32>
    %220 = arith.addf %218, %219 : vector<1x128xf32>
    %221 = arith.negf %220 : vector<1x128xf32>
    %222 = math.exp %221 : vector<1x128xf32>
    %cst_55 = arith.constant 1.000000e+00 : f32
    %223 = vector.broadcast %cst_55 : f32 to vector<1x128xf32>
    %224 = arith.addf %223, %222 : vector<1x128xf32>
    %225 = arith.divf %223, %224 : vector<1x128xf32>
    %226 = vector.extract_strided_slice %214 {offsets = [0, 128], sizes = [1, 128], strides = [1, 1]} : vector<1x384xf32> to vector<1x128xf32>
    %227 = vector.extract_strided_slice %217 {offsets = [0, 128], sizes = [1, 128], strides = [1, 1]} : vector<1x384xf32> to vector<1x128xf32>
    %228 = arith.addf %226, %227 : vector<1x128xf32>
    %229 = arith.negf %228 : vector<1x128xf32>
    %230 = math.exp %229 : vector<1x128xf32>
    %cst_56 = arith.constant 1.000000e+00 : f32
    %231 = vector.broadcast %cst_56 : f32 to vector<1x128xf32>
    %232 = arith.addf %231, %230 : vector<1x128xf32>
    %233 = arith.divf %231, %232 : vector<1x128xf32>
    %234 = vector.extract_strided_slice %214 {offsets = [0, 256], sizes = [1, 128], strides = [1, 1]} : vector<1x384xf32> to vector<1x128xf32>
    %235 = vector.extract_strided_slice %217 {offsets = [0, 256], sizes = [1, 128], strides = [1, 1]} : vector<1x384xf32> to vector<1x128xf32>
    %236 = arith.mulf %225, %235 : vector<1x128xf32>
    %237 = arith.addf %234, %236 : vector<1x128xf32>
    %238 = math.tanh %237 : vector<1x128xf32>
    %cst_57 = arith.constant 1.000000e+00 : f32
    %239 = vector.broadcast %cst_57 : f32 to vector<1x128xf32>
    %240 = arith.subf %239, %233 : vector<1x128xf32>
    %241 = arith.mulf %240, %238 : vector<1x128xf32>
    %242 = arith.mulf %233, %210 : vector<1x128xf32>
    %243 = arith.addf %241, %242 : vector<1x128xf32>
    %244 = arith.index_cast %c6_i32 : i32 to index
    %c0_58 = arith.constant 0 : index
    %245 = vector.load %arg6[%244, %c0_58] : memref<8x128xf32, #tpu.memory_space<vmem>>, vector<1x128xf32>
    tpu.vector_store %arg6[%244, %c0_58], %243 {strides = array<i32>} : memref<8x128xf32, #tpu.memory_space<vmem>>, vector<1x128xf32>,
    %c7_i32 = arith.constant 7 : i32
    %246 = arith.index_cast %c7_i32 : i32 to index
    %c0_59 = arith.constant 0 : index
    %247 = vector.load %arg7[%246, %c0_59] : memref<8x384xf32, #tpu.memory_space<vmem>>, vector<1x384xf32>
    %248 = arith.truncf %243 : vector<1x128xf32> to vector<1x128xbf16>
    %cst_60 = arith.constant dense<0.000000e+00> : vector<1x384xf32>
    %249 = tpu.matmul %248, %12, %cst_60 {dimension_numbers = #tpu.dot_dimension_numbers<[1], [0], [0], [1], [0, 0, 1, 1], [], []>} : vector<1x128xbf16>, vector<128x384xbf16>, vector<1x384xf32> -> vector<1x384xf32>
    %250 = arith.addf %249, %13 : vector<1x384xf32>
    %251 = vector.extract_strided_slice %247 {offsets = [0, 0], sizes = [1, 128], strides = [1, 1]} : vector<1x384xf32> to vector<1x128xf32>
    %252 = vector.extract_strided_slice %250 {offsets = [0, 0], sizes = [1, 128], strides = [1, 1]} : vector<1x384xf32> to vector<1x128xf32>
    %253 = arith.addf %251, %252 : vector<1x128xf32>
    %254 = arith.negf %253 : vector<1x128xf32>
    %255 = math.exp %254 : vector<1x128xf32>
    %cst_61 = arith.constant 1.000000e+00 : f32
    %256 = vector.broadcast %cst_61 : f32 to vector<1x128xf32>
    %257 = arith.addf %256, %255 : vector<1x128xf32>
    %258 = arith.divf %256, %257 : vector<1x128xf32>
    %259 = vector.extract_strided_slice %247 {offsets = [0, 128], sizes = [1, 128], strides = [1, 1]} : vector<1x384xf32> to vector<1x128xf32>
    %260 = vector.extract_strided_slice %250 {offsets = [0, 128], sizes = [1, 128], strides = [1, 1]} : vector<1x384xf32> to vector<1x128xf32>
    %261 = arith.addf %259, %260 : vector<1x128xf32>
    %262 = arith.negf %261 : vector<1x128xf32>
    %263 = math.exp %262 : vector<1x128xf32>
    %cst_62 = arith.constant 1.000000e+00 : f32
    %264 = vector.broadcast %cst_62 : f32 to vector<1x128xf32>
    %265 = arith.addf %264, %263 : vector<1x128xf32>
    %266 = arith.divf %264, %265 : vector<1x128xf32>
    %267 = vector.extract_strided_slice %247 {offsets = [0, 256], sizes = [1, 128], strides = [1, 1]} : vector<1x384xf32> to vector<1x128xf32>
    %268 = vector.extract_strided_slice %250 {offsets = [0, 256], sizes = [1, 128], strides = [1, 1]} : vector<1x384xf32> to vector<1x128xf32>
    %269 = arith.mulf %258, %268 : vector<1x128xf32>
    %270 = arith.addf %267, %269 : vector<1x128xf32>
    %271 = math.tanh %270 : vector<1x128xf32>
    %cst_63 = arith.constant 1.000000e+00 : f32
    %272 = vector.broadcast %cst_63 : f32 to vector<1x128xf32>
    %273 = arith.subf %272, %266 : vector<1x128xf32>
    %274 = arith.mulf %273, %271 : vector<1x128xf32>
    %275 = arith.mulf %266, %243 : vector<1x128xf32>
    %276 = arith.addf %274, %275 : vector<1x128xf32>
    %277 = arith.index_cast %c7_i32 : i32 to index
    %c0_64 = arith.constant 0 : index
    %278 = vector.load %arg6[%277, %c0_64] : memref<8x128xf32, #tpu.memory_space<vmem>>, vector<1x128xf32>
    tpu.vector_store %arg6[%277, %c0_64], %276 {strides = array<i32>} : memref<8x128xf32, #tpu.memory_space<vmem>>, vector<1x128xf32>,
    %c8_i32 = arith.constant 8 : i32
    return
  }
}

</mosaic_0001>

<bundles_post_ra>
// kernel: tpu_custom_call.1
= control target key start
LH: loop header
LB: loop body
LE: loop exit
PB: predicated region body
PF: predicated region fallthrough
CT: control target
= control target key end

     0   :  { %11 = vsyncpa [#allocation4], 0  ;;  %s2450_s0 = inlined_call_operand.hbm [shape: f32[8,128], index: 0, kind: input, shape index: {}]   ;;  %s2451_s1 = inlined_call_operand.vmem [shape: f32[1,128], index: 1, kind: input, shape index: {}]   ;;  %s2452_s2 = inlined_call_operand.hbm [shape: bf16[128,384], index: 2, kind: input, shape index: {}]   ;;  %s2453_s3 = inlined_call_operand.hbm [shape: bf16[128,384], index: 3, kind: input, shape index: {}]   ;;  %s2454_s4 = inlined_call_operand.vmem [shape: f32[1,384], index: 4, kind: input, shape index: {}]   ;;  %s2455_s5 = inlined_call_operand.vmem [shape: f32[1,384], index: 5, kind: input, shape index: {}]   ;;  %s2456_s6 = inlined_call_operand.hbm [shape: f32[8,128], index: 6, kind: output, shape index: {}]  }
   0x1   :  { %12 = vsyncpa [#allocation7], 0 }
   0x2   :  { %13 = vsyncpa [#allocation5], 0  ;;  %s1997_s21 = smov [#allocation6]  }
   0x3   :  { %s31_s22 = sshll.u32 %s1997_s21, 4  ;;  %s32_s22 = int_to_ptr.vmem [resolvable:$true] %s31_s22 }
   0x4   :  { %s1919_s23 = scalar_lea.vmem %s32_s22, 3072  ;;  %p1924_p1 = scmp.lt.s32.totalorder %s32_s22, %s32_s22 }
   0x5   :  { %p1920_p0 = scmp.ne.s32.totalorder %s32_s22, %s1919_s23  ;;  %p1925_p2 = scmp.lt.s32.totalorder %s1919_s23, %s1919_s23 }
   0x7   :  { %p1926_p3 = por %p1925_p2, %p1924_p1 }
   0x9   :  { %p1927_p4 = pnand %p1926_p3, %p1920_p0 }
   0xb   :  { %1930 = shalt.err (!%p1927_p4)
}
   0xc   :  { %s1998_s24 = smov 192   ;;  %s1999_s25 = smov 12  }
   0xd   :  { %37 = dma.hbm_to_vmem [thread:$0]  %s2452_s2, 3072, %s32_s22, [#allocation7], %s1998_s24, %s1998_s24, %s1999_s25  }
   0xe   :  { %s2000_s28 = smov [#allocation3]   ;;  %s2001_s30 = smov [#allocation8]  }
   0xf   :  { %s20_s29 = sshll.u32 %s2000_s28, 4  ;;  %s43_s7 = sshll.u32 %s2001_s30, 4  ;;  %s21_s29 = int_to_ptr.vmem [resolvable:$true] %s20_s29  ;;  %s44_s7 = int_to_ptr.vmem [resolvable:$true] %s43_s7 }
  0x10   :  { %s1939_s8 = scalar_lea.vmem %s21_s29, 128  ;;  %p1944_p6 = scmp.lt.s32.totalorder %s21_s29, %s21_s29 }
  0x11   :  { %p1940_p5 = scmp.ne.s32.totalorder %s21_s29, %s1939_s8  ;;  %p1945_p7 = scmp.lt.s32.totalorder %s1939_s8, %s1939_s8 }
  0x13   :  { %p1946_p8 = por %p1945_p7, %p1944_p6 }
  0x15   :  { %p1947_p9 = pnand %p1946_p8, %p1940_p5 }
  0x17   :  { %1950 = shalt.err (!%p1947_p9)
}
  0x18   :  { %23 = dma.hbm_to_vmem [thread:$0]  %s2450_s0, 128, %s21_s29, [#allocation4]  }
  0x19   :  { %s1959_s11 = scalar_lea.vmem %s44_s7, 3072  ;;  %p1964_p11 = scmp.lt.s32.totalorder %s44_s7, %s44_s7 }
  0x1a   :  { %p1960_p10 = scmp.ne.s32.totalorder %s44_s7, %s1959_s11  ;;  %p1965_p12 = scmp.lt.s32.totalorder %s1959_s11, %s1959_s11 }
  0x1c   :  { %p1966_p13 = por %p1965_p12, %p1964_p11 }
  0x1e   :  { %p1967_p0 = pnand %p1966_p13, %p1960_p10 }
  0x20   :  { %1970 = shalt.err (!%p1967_p0)
}
  0x21   :  { %49 = dma.hbm_to_vmem [thread:$0]  %s2453_s3, 3072, %s44_s7, [#allocation7], %s1998_s24, %s1998_s24, %s1999_s25  }
  0x22   :  { %1991 = dma.done.wait [#allocation4], 128  }
  0x23   :  { %1992 = vsyncadd [#allocation4], 4294967168 }
  0x24   :  { %1993 = dma.done.wait [#allocation7], 6144  }
  0x25   :  { %1994 = vsyncadd [#allocation7], 4294961152  ;;  %v2002_v0 = vmov 0.0   ;;  %v2003_v1 = vmov 0   ;;  %vm2004_vm0 = vmmov 0   ;;  %v64_v23 = vld [vmem:[#allocation3] sm:$0xff]  ;;  %v101_v55 = vlaneseq }
  0x26   :  { %1555 = vmatprep.subr.bf16.mxu1 %v2002_v0  ;;  %328 = vst [vmem:[#allocation9] sm:$0xff] %v2002_v0  ;;  %276 = vmatprep.mubr.bf16.mxu0 %v2003_v1  ;;  %v1744_v2 = vld [vmem:[#allocation6 + $0xac] ss:$12 sps:$4 sm:$0xff]   ;;  %v1746_v3 = vld [vmem:[#allocation6 + $0xa8] ss:$12 sps:$4 sm:$0xff]   ;;  %v65_v26 = vmax.f32 %v64_v23, 0.0 }
  0x27   :  { %1571 = vmatprep.mubr.msk.bf16.mxu1 %vm2004_vm0, %v2002_v0  ;;  %244 = vmatprep.subr.bf16.mxu0 %v1744_v2  ;;  %v1747_v4 = vld [vmem:[#allocation6 + $0xb0] ss:$12 sps:$4 sm:$0xff]   ;;  %v1748_v5 = vld [vmem:[#allocation6 + $0x94] ss:$12 sps:$4 sm:$0xff]   ;;  %v1751_v7 = vld [vmem:[#allocation6 + $0x98] ss:$12 sps:$4 sm:$0xff]  }
  0x28   :  { %245 = vmatpush1.bf16.msra.mxu0 %v1746_v3  ;;  %v1750_v6 = vld [vmem:[#allocation6 + $0x90] ss:$12 sps:$4 sm:$0xff]   ;;  %1556 = vmatpush3.bf16.msra.mxu1 %v1747_v4  ;;  %v1754_v9 = vld [vmem:[#allocation6 + $0x78] ss:$12 sps:$4 sm:$0xff]   ;;  %v1755_v10 = vld [vmem:[#allocation6 + $0x80] ss:$12 sps:$4 sm:$0xff]   ;;  %v66_v29 = vpack.c.bf16 %v65_v26, %v65_v26 }
  0x29   :  { %246 = vmatprep.subr.bf16.mxu0 %v1748_v5  ;;  %1557 = vmatprep.subr.bf16.mxu1 %v2002_v0  ;;  %v1752_v8 = vld [vmem:[#allocation6 + $0x7c] ss:$12 sps:$4 sm:$0xff]   ;;  %v1756_v11 = vld [vmem:[#allocation6 + $0x64] ss:$12 sps:$4 sm:$0xff]   ;;  %v1758_v12 = vld [vmem:[#allocation6 + $0x60] ss:$12 sps:$4 sm:$0xff]  }
  0x2a   :  { %v1759_v13 = vld [vmem:[#allocation6 + $0x68] ss:$12 sps:$4 sm:$0xff]   ;;  %v1760_v14 = vld [vmem:[#allocation6 + $0x4c] ss:$12 sps:$4 sm:$0xff]   ;;  %v1763_v16 = vld [vmem:[#allocation6 + $0x50] ss:$12 sps:$4 sm:$0xff]  }
  0x2b   :  { %v1762_v15 = vld [vmem:[#allocation6 + $0x48] ss:$12 sps:$4 sm:$0xff]   ;;  %v1766_v18 = vld [vmem:[#allocation6 + $0x30] ss:$12 sps:$4 sm:$0xff]   ;;  %v1767_v19 = vld [vmem:[#allocation6 + $0x38] ss:$12 sps:$4 sm:$0xff]  }
  0x2c   :  { %247 = vmatpush1.bf16.msra.mxu0 %v1750_v6  ;;  %1558 = vmatpush3.bf16.msra.mxu1 %v1751_v7  ;;  %v1764_v17 = vld [vmem:[#allocation6 + $0x34] ss:$12 sps:$4 sm:$0xff]   ;;  %v1768_v20 = vld [vmem:[#allocation6 + $0x1c] ss:$12 sps:$4 sm:$0xff]   ;;  %v1770_v21 = vld [vmem:[#allocation6 + $0x18] ss:$12 sps:$4 sm:$0xff]  }
  0x2d   :  { %248 = vmatprep.subr.bf16.mxu0 %v1752_v8  ;;  %1559 = vmatprep.subr.bf16.mxu1 %v2002_v0  ;;  %v1771_v22 = vld [vmem:[#allocation6 + $0x20] ss:$12 sps:$4 sm:$0xff]   ;;  %v1772_v24 = vld [vmem:[#allocation6 + $0x4] ss:$12 sps:$4 sm:$0xff]   ;;  %v1775_v27 = vld [vmem:[#allocation6 + $0x8] ss:$12 sps:$4 sm:$0xff]  }
  0x2e   :  { %v1774_v25 = vld [vmem:[#allocation6] ss:$12 sps:$4 sm:$0xff]   ;;  %v2064_v30 = vld [vmem:[#allocation8 + $0xa8] ss:$12 sps:$4 sm:$0xff]   ;;  %v2069_v32 = vld [vmem:[#allocation8 + $0xb0] ss:$12 sps:$4 sm:$0xff]  }
  0x2f   :  { %v2061_v28 = vld [vmem:[#allocation8 + $0xac] ss:$12 sps:$4 sm:$0xff]   ;;  %v2066_v31 = vld [vmem:[#allocation8 + $0x94] ss:$12 sps:$4 sm:$0xff]   ;;  %v2072_v33 = vld [vmem:[#allocation8 + $0x90] ss:$12 sps:$4 sm:$0xff]  }
  0x30   :  { %249 = vmatpush1.bf16.msra.mxu0 %v1754_v9  ;;  %1560 = vmatpush3.bf16.msra.mxu1 %v1755_v10  ;;  %v2075_v34 = vld [vmem:[#allocation8 + $0x7c] ss:$12 sps:$4 sm:$0xff]   ;;  %v2079_v35 = vld [vmem:[#allocation8 + $0x98] ss:$12 sps:$4 sm:$0xff]   ;;  %v2092_v38 = vld [vmem:[#allocation8 + $0x80] ss:$12 sps:$4 sm:$0xff]  }
  0x31   :  { %250 = vmatprep.subr.bf16.mxu0 %v1756_v11  ;;  %1561 = vmatprep.subr.bf16.mxu1 %v2002_v0  ;;  %v2086_v36 = vld [vmem:[#allocation8 + $0x78] ss:$12 sps:$4 sm:$0xff]   ;;  %v2096_v39 = vld [vmem:[#allocation8 + $0x60] ss:$12 sps:$4 sm:$0xff]   ;;  %v2102_v41 = vld [vmem:[#allocation8 + $0x68] ss:$12 sps:$4 sm:$0xff]  }
  0x32   :  { %v2089_v37 = vld [vmem:[#allocation8 + $0x64] ss:$12 sps:$4 sm:$0xff]   ;;  %v2099_v40 = vld [vmem:[#allocation8 + $0x4c] ss:$12 sps:$4 sm:$0xff]   ;;  %v2106_v42 = vld [vmem:[#allocation8 + $0x48] ss:$12 sps:$4 sm:$0xff]  }
  0x33   :  { %v2109_v43 = vld [vmem:[#allocation8 + $0x34] ss:$12 sps:$4 sm:$0xff]   ;;  %v2112_v44 = vld [vmem:[#allocation8 + $0x50] ss:$12 sps:$4 sm:$0xff]   ;;  %v2122_v47 = vld [vmem:[#allocation8 + $0x38] ss:$12 sps:$4 sm:$0xff]  }
  0x34   :  { %251 = vmatpush1.bf16.msra.mxu0 %v1758_v12  ;;  %1562 = vmatpush3.bf16.msra.mxu1 %v1759_v13  ;;  %v2116_v45 = vld [vmem:[#allocation8 + $0x30] ss:$12 sps:$4 sm:$0xff]   ;;  %v2126_v48 = vld [vmem:[#allocation8 + $0x18] ss:$12 sps:$4 sm:$0xff]   ;;  %v2132_v50 = vld [vmem:[#allocation8 + $0x20] ss:$12 sps:$4 sm:$0xff]  }
  0x35   :  { %252 = vmatprep.subr.bf16.mxu0 %v1760_v14  ;;  %1563 = vmatprep.subr.bf16.mxu1 %v2002_v0  ;;  %v2119_v46 = vld [vmem:[#allocation8 + $0x1c] ss:$12 sps:$4 sm:$0xff]   ;;  %v2129_v49 = vld [vmem:[#allocation8 + $0x4] ss:$12 sps:$4 sm:$0xff]   ;;  %v2136_v51 = vld [vmem:[#allocation8] ss:$12 sps:$4 sm:$0xff]  }
  0x36   :  { %v2141_v52 = vld [vmem:[%s2451_s1] sm:$0x1]  ;;  %v2145_v53 = vld [vmem:[#allocation8 + $0x8] ss:$12 sps:$4 sm:$0xff]   ;;  %v102_v56 = vshrl.u32 %v101_v55, 7 }
  0x37   :  { %v364_v54 = vpack.c.bf16 %v2141_v52, %v2141_v52  ;;  %v99_v58 = vld [vmem:[%s2454_s4] sm:$0x7] }
  0x38   :  { %253 = vmatpush1.bf16.msra.mxu0 %v1762_v15  ;;  %1564 = vmatpush3.bf16.msra.mxu1 %v1763_v16  ;;  %v103_v57 = vsub.s32 0, %v102_v56  ;;  %v111_v59 = vsub.s32 2, %v102_v56  ;;  %v107_v60 = vsub.s32 1, %v102_v56  ;;  %v361_v13 = vld [vmem:[%s2455_s5] sm:$0x7]  ;;  %s2005_s5 = smov [#allocation9]  }
  0x39   :  { %254 = vmatprep.subr.bf16.mxu0 %v1764_v17  ;;  %1565 = vmatprep.subr.bf16.mxu1 %v2002_v0  ;;  %s1400_s15 = sshll.u32 %s2005_s5, 4  ;;  %s1401_s15 = int_to_ptr.vmem [resolvable:$true] %s1400_s15 }
  0x3a   :  { %v104_v61 = vrot.slane %v99_v58, %v103_v57  ;;  %v112_v62 = vrot.slane %v99_v58, %v111_v59  ;;  %v108_v63 = vrot.slane %v99_v58, %v107_v60  ;;  %v2195_v14 = vrot.slane %v361_v13, %v103_v57  ;;  %s1971_s16 = scalar_lea.vmem %s1401_s15, 128  ;;  %p1976_p2 = scmp.lt.s32.totalorder %s1401_s15, %s1401_s15 }
  0x3b   :  { %v2197_v16 = vrot.slane %v361_v13, %v107_v60  ;;  %v2201_v60 = vrot.slane %v361_v13, %v111_v59  ;;  %p1972_p1 = scmp.ne.s32.totalorder %s1401_s15, %s1971_s16  ;;  %p1977_p3 = scmp.lt.s32.totalorder %s1971_s16, %s1971_s16 }
  0x3c   :  { %255 = vmatpush1.bf16.msra.mxu0 %v1766_v18  ;;  %1566 = vmatpush3.bf16.msra.mxu1 %v1767_v19 }
  0x3d   :  { %256 = vmatprep.subr.bf16.mxu0 %v1768_v20  ;;  %1567 = vmatprep.subr.bf16.mxu1 %v2002_v0  ;;  %p1978_p4 = por %p1977_p3, %p1976_p2 }
  0x3f   :  { %p1979_p5 = pnand %p1978_p4, %p1972_p1 }
  0x40   :  { %257 = vmatpush1.bf16.msra.mxu0 %v1770_v21  ;;  %1568 = vmatpush3.bf16.msra.mxu1 %v1771_v22 }
  0x41   :  { %258 = vmatprep.subr.bf16.mxu0 %v1772_v24  ;;  %1569 = vmatprep.subr.bf16.mxu1 %v2002_v0 }
  0x44   :  { %259 = vmatpush1.bf16.msra.mxu0 %v1774_v25  ;;  %1570 = vmatpush3.bf16.msra.mxu1 %v1775_v27 }
  0x45   :  { %509 = vmatprep.subr.bf16.mxu0 %v2061_v28  ;;  %1575 = vmatprep.subr.bf16.mxu1 %v2002_v0 }
  0x47   :  { %277 = vmatmul.mubr.bf16.vlgmr.msra.gmra.mxu0 %v66_v29  ;;  %1572 = vmatmul.mubr.bf16.vlgmr.msra.gmra.mxu1 %v66_v29 }
  0x48   :  { %510 = vmatpush1.bf16.msra.mxu0 %v2064_v30  ;;  %1576 = vmatpush3.bf16.msra.mxu1 %v2069_v32 }
  0x49   :  { %511 = vmatprep.subr.bf16.mxu0 %v2066_v31  ;;  %541 = vmatprep.mubr.bf16.mxu0 %v2003_v1 }
  0x4a   :  { %1577 = vmatprep.subr.bf16.mxu1 %v2002_v0  ;;  %1591 = vmatprep.mubr.msk.bf16.mxu1 %vm2004_vm0, %v2002_v0 }
  0x4c   :  { %512 = vmatpush1.bf16.msra.mxu0 %v2072_v33  ;;  %1578 = vmatpush3.bf16.msra.mxu1 %v2079_v35 }
  0x4d   :  { %513 = vmatprep.subr.bf16.mxu0 %v2075_v34  ;;  %1579 = vmatprep.subr.bf16.mxu1 %v2002_v0 }
  0x50   :  { %514 = vmatpush1.bf16.msra.mxu0 %v2086_v36  ;;  %1580 = vmatpush3.bf16.msra.mxu1 %v2092_v38 }
  0x51   :  { %515 = vmatprep.subr.bf16.mxu0 %v2089_v37  ;;  %1581 = vmatprep.subr.bf16.mxu1 %v2002_v0 }
  0x54   :  { %516 = vmatpush1.bf16.msra.mxu0 %v2096_v39  ;;  %1582 = vmatpush3.bf16.msra.mxu1 %v2102_v41 }
  0x55   :  { %517 = vmatprep.subr.bf16.mxu0 %v2099_v40  ;;  %1583 = vmatprep.subr.bf16.mxu1 %v2002_v0 }
  0x58   :  { %518 = vmatpush1.bf16.msra.mxu0 %v2106_v42  ;;  %1584 = vmatpush3.bf16.msra.mxu1 %v2112_v44 }
  0x59   :  { %519 = vmatprep.subr.bf16.mxu0 %v2109_v43  ;;  %1585 = vmatprep.subr.bf16.mxu1 %v2002_v0 }
  0x5c   :  { %520 = vmatpush1.bf16.msra.mxu0 %v2116_v45  ;;  %1586 = vmatpush3.bf16.msra.mxu1 %v2122_v47 }
  0x5d   :  { %521 = vmatprep.subr.bf16.mxu0 %v2119_v46  ;;  %1587 = vmatprep.subr.bf16.mxu1 %v2002_v0 }
  0x60   :  { %522 = vmatpush1.bf16.msra.mxu0 %v2126_v48  ;;  %1588 = vmatpush3.bf16.msra.mxu1 %v2132_v50 }
  0x61   :  { %523 = vmatprep.subr.bf16.mxu0 %v2129_v49  ;;  %1589 = vmatprep.subr.bf16.mxu1 %v2002_v0 }
  0x64   :  { %524 = vmatpush1.bf16.msra.mxu0 %v2136_v51  ;;  %1590 = vmatpush3.bf16.msra.mxu1 %v2145_v53 }
  0x65   :  { %620 = vmatprep.subr.bf16.mxu0 %v2061_v28  ;;  %1595 = vmatprep.subr.bf16.mxu1 %v2002_v0 }
  0x67   :  { %542 = vmatmul.mubr.bf16.vlgmr.msra.gmra.mxu0 %v364_v54  ;;  %1592 = vmatmul.mubr.bf16.vlgmr.msra.gmra.mxu1 %v364_v54 }
  0x68   :  { %621 = vmatpush1.bf16.msra.mxu0 %v2064_v30  ;;  %1596 = vmatpush3.bf16.msra.mxu1 %v2069_v32 }
  0x69   :  { %622 = vmatprep.subr.bf16.mxu0 %v2066_v31  ;;  %1597 = vmatprep.subr.bf16.mxu1 %v2002_v0 }
  0x6a   :  { %652 = vmatprep.mubr.bf16.mxu0 %v2003_v1  ;;  %1611 = vmatprep.mubr.msk.bf16.mxu1 %vm2004_vm0, %v2002_v0 }
  0x6c   :  { %623 = vmatpush1.bf16.msra.mxu0 %v2072_v33  ;;  %1598 = vmatpush3.bf16.msra.mxu1 %v2079_v35 }
  0x6d   :  { %624 = vmatprep.subr.bf16.mxu0 %v2075_v34  ;;  %1599 = vmatprep.subr.bf16.mxu1 %v2002_v0 }
  0x70   :  { %625 = vmatpush1.bf16.msra.mxu0 %v2086_v36  ;;  %1600 = vmatpush3.bf16.msra.mxu1 %v2092_v38 }
  0x71   :  { %626 = vmatprep.subr.bf16.mxu0 %v2089_v37  ;;  %1601 = vmatprep.subr.bf16.mxu1 %v2002_v0 }
  0x74   :  { %627 = vmatpush1.bf16.msra.mxu0 %v2096_v39  ;;  %1602 = vmatpush3.bf16.msra.mxu1 %v2102_v41 }
  0x75   :  { %628 = vmatprep.subr.bf16.mxu0 %v2099_v40  ;;  %1603 = vmatprep.subr.bf16.mxu1 %v2002_v0 }
  0x78   :  { %629 = vmatpush1.bf16.msra.mxu0 %v2106_v42  ;;  %1604 = vmatpush3.bf16.msra.mxu1 %v2112_v44 }
  0x79   :  { %630 = vmatprep.subr.bf16.mxu0 %v2109_v43  ;;  %1605 = vmatprep.subr.bf16.mxu1 %v2002_v0 }
  0x7c   :  { %631 = vmatpush1.bf16.msra.mxu0 %v2116_v45  ;;  %1606 = vmatpush3.bf16.msra.mxu1 %v2122_v47 }
  0x7d   :  { %632 = vmatprep.subr.bf16.mxu0 %v2119_v46  ;;  %1607 = vmatprep.subr.bf16.mxu1 %v2002_v0 }
  0x80   :  { %633 = vmatpush1.bf16.msra.mxu0 %v2126_v48  ;;  %1608 = vmatpush3.bf16.msra.mxu1 %v2132_v50 }
  0x81   :  { %634 = vmatprep.subr.bf16.mxu0 %v2129_v49  ;;  %1609 = vmatprep.subr.bf16.mxu1 %v2002_v0 }
  0x84   :  { %635 = vmatpush1.bf16.msra.mxu0 %v2136_v51  ;;  %1610 = vmatpush3.bf16.msra.mxu1 %v2145_v53 }
  0x85   :  { %731 = vmatprep.subr.bf16.mxu0 %v2061_v28  ;;  %1615 = vmatprep.subr.bf16.mxu1 %v2002_v0 }
 0x107   :  { %v278_v2 = vpop.f32.mrf.mxu0  ;;  %v319_v4 = vpop.f32.mrf.mxu1 }
 0x108   :  { %v279_v3 = vadd.f32 %v278_v2, %v104_v61  ;;  %v320_v6 = vadd.f32 %v319_v4, %v112_v62 }
 0x109   :  { %v280_v5 = vpop.f32.mrf.mxu0  ;;  %v1573_v8 = vpop.f32.mrf.mxu1 }
 0x10a   :  { %325 = vst [vmem:[#allocation2] sm:$0xff] %v279_v3  ;;  %v281_v7 = vadd.f32 %v280_v5, %v108_v63  ;;  %327 = vst [vmem:[#allocation2 + $0x10] sm:$0xff] %v320_v6 }
 0x10b   :  { %v282_v9 = vpop.f32.mrf.mxu0  ;;  %v322_v10 = vpop.f32.mrf.mxu1 }
 0x10c   :  { %326 = vst [vmem:[#allocation2 + $0x8] sm:$0xff] %v281_v7 }
 0x10d   :  { %v283_v11 = vpop.f32.mrf.mxu0  ;;  %v1574_v12 = vpop.f32.mrf.mxu1 }
 0x113   :  { %v363_v19 = vld [vmem:[#allocation2] ss:$8 sm:$0x7] }
 0x114   :  { %v598_v29 = vrot.slane %v363_v19, 1  ;;  %v608_v4 = vrot.slane %v363_v19, 2 }
 0x127   :  { %v543_v15 = vpop.f32.mrf.mxu0  ;;  %v584_v18 = vpop.f32.mrf.mxu1 }
 0x128   :  { %v544_v17 = vadd.f32 %v543_v15, %v2195_v14  ;;  %v585_v63 = vadd.f32 %v584_v18, %v2201_v60  ;;  %v618_v15 = vld [vmem:[#allocation2 + $0x1] ss:$8 sm:$0x7] }
 0x129   :  { %v545_v20 = vpop.f32.mrf.mxu0  ;;  %v1593_v22 = vpop.f32.mrf.mxu1 }
 0x12a   :  { %v590_v21 = vadd.f32 %v544_v17, %v363_v19  ;;  %v546_v25 = vadd.f32 %v545_v20, %v2197_v16 }
 0x12b   :  { %v547_v23 = vpop.f32.mrf.mxu0  ;;  %v587_v26 = vpop.f32.mrf.mxu1 }
 0x12c   :  { %v1458_v24 = vmul.f32 -1.442695, %v590_v21  ;;  %v600_v55 = vadd.f32 %v598_v29, %v546_v25  ;;  %v709_v26 = vrot.slane %v618_v15, 1 }
 0x12d   :  { %v548_v27 = vpop.f32.mrf.mxu0  ;;  %v1594_v54 = vpop.f32.mrf.mxu1 }
 0x12e   :  { %1808 = vpow2.f32 %v1458_v24  ;;  %v1459_v56 = vmul.f32 -1.442695, %v600_v55 }
 0x130   :  { %1810 = vpow2.f32 %v1459_v56 }
 0x13b   :  { %v1809_v57 = vpop.eup %1808 }
 0x13c   :  { %v594_v58 = vadd.f32 1.0, %v1809_v57 }
 0x13d   :  { %v1811_v61 = vpop.eup %1810 }
 0x13e   :  { %1812 = vrcp.f32 %v594_v58  ;;  %v604_v62 = vadd.f32 1.0, %v1811_v61 }
 0x140   :  { %1814 = vrcp.f32 %v604_v62 }
 0x14b   :  { %v1813_v2 = vpop.eup %1812 }
 0x14c   :  { %v607_v3 = vmul.f32 %v1813_v2, %v585_v63  ;;  %v719_v63 = vrot.slane %v618_v15, 2 }
 0x14d   :  { %v1815_v6 = vpop.eup %1814 }
 0x14e   :  { %v610_v5 = vadd.f32 %v608_v4, %v607_v3  ;;  %v612_v7 = vsub.f32 1.0, %v1815_v6  ;;  %v614_v10 = vmul.f32 %v1815_v6, %v2141_v52 }
 0x150   :  { %1816 = vtanh.f32 %v610_v5 }
 0x15d   :  { %v1817_v8 = vpop.eup %1816 }
 0x15e   :  { %v613_v9 = vmul.f32 %v1817_v8, %v612_v7 }
 0x160   :  { %v2205_v11 = vadd.f32 %v614_v10, %v613_v9 }
 0x162   :  { %616 = vst [vmem:[#allocation9] sm:$0x1] %v2205_v11  ;;  %v619_v59 = vpack.c.bf16 %v2205_v11, %v2205_v11 }
 0x164   :  { %653 = vmatmul.mubr.bf16.vlgmr.msra.gmra.mxu0 %v619_v59  ;;  %1612 = vmatmul.mubr.bf16.vlgmr.msra.gmra.mxu1 %v619_v59 }
 0x165   :  { %732 = vmatpush1.bf16.msra.mxu0 %v2064_v30  ;;  %1616 = vmatpush3.bf16.msra.mxu1 %v2069_v32 }
 0x166   :  { %733 = vmatprep.subr.bf16.mxu0 %v2066_v31  ;;  %1617 = vmatprep.subr.bf16.mxu1 %v2002_v0 }
 0x167   :  { %763 = vmatprep.mubr.bf16.mxu0 %v2003_v1  ;;  %1631 = vmatprep.mubr.msk.bf16.mxu1 %vm2004_vm0, %v2002_v0 }
 0x169   :  { %734 = vmatpush1.bf16.msra.mxu0 %v2072_v33  ;;  %1618 = vmatpush3.bf16.msra.mxu1 %v2079_v35 }
 0x16a   :  { %735 = vmatprep.subr.bf16.mxu0 %v2075_v34  ;;  %1619 = vmatprep.subr.bf16.mxu1 %v2002_v0 }
 0x16d   :  { %736 = vmatpush1.bf16.msra.mxu0 %v2086_v36  ;;  %1620 = vmatpush3.bf16.msra.mxu1 %v2092_v38 }
 0x16e   :  { %737 = vmatprep.subr.bf16.mxu0 %v2089_v37  ;;  %1621 = vmatprep.subr.bf16.mxu1 %v2002_v0 }
 0x171   :  { %738 = vmatpush1.bf16.msra.mxu0 %v2096_v39  ;;  %1622 = vmatpush3.bf16.msra.mxu1 %v2102_v41 }
 0x172   :  { %739 = vmatprep.subr.bf16.mxu0 %v2099_v40  ;;  %1623 = vmatprep.subr.bf16.mxu1 %v2002_v0 }
 0x175   :  { %740 = vmatpush1.bf16.msra.mxu0 %v2106_v42  ;;  %1624 = vmatpush3.bf16.msra.mxu1 %v2112_v44 }
 0x176   :  { %741 = vmatprep.subr.bf16.mxu0 %v2109_v43  ;;  %1625 = vmatprep.subr.bf16.mxu1 %v2002_v0 }
 0x179   :  { %742 = vmatpush1.bf16.msra.mxu0 %v2116_v45  ;;  %1626 = vmatpush3.bf16.msra.mxu1 %v2122_v47 }
 0x17a   :  { %743 = vmatprep.subr.bf16.mxu0 %v2119_v46  ;;  %1627 = vmatprep.subr.bf16.mxu1 %v2002_v0 }
 0x17d   :  { %744 = vmatpush1.bf16.msra.mxu0 %v2126_v48  ;;  %1628 = vmatpush3.bf16.msra.mxu1 %v2132_v50 }
 0x17e   :  { %745 = vmatprep.subr.bf16.mxu0 %v2129_v49  ;;  %1629 = vmatprep.subr.bf16.mxu1 %v2002_v0 }
 0x181   :  { %746 = vmatpush1.bf16.msra.mxu0 %v2136_v51  ;;  %1630 = vmatpush3.bf16.msra.mxu1 %v2145_v53 }
 0x182   :  { %842 = vmatprep.subr.bf16.mxu0 %v2061_v28  ;;  %1635 = vmatprep.subr.bf16.mxu1 %v2002_v0 }
 0x224   :  { %v654_v52 = vpop.f32.mrf.mxu0  ;;  %v695_v12 = vpop.f32.mrf.mxu1 }
 0x225   :  { %v655_v13 = vadd.f32 %v654_v52, %v2195_v14  ;;  %v696_v58 = vadd.f32 %v695_v12, %v2201_v60  ;;  %v729_v52 = vld [vmem:[#allocation2 + $0x2] ss:$8 sm:$0x7] }
 0x226   :  { %v656_v17 = vpop.f32.mrf.mxu0  ;;  %v1613_v18 = vpop.f32.mrf.mxu1 }
 0x227   :  { %v701_v19 = vadd.f32 %v655_v13, %v618_v15  ;;  %v657_v23 = vadd.f32 %v656_v17, %v2197_v16 }
 0x228   :  { %v658_v20 = vpop.f32.mrf.mxu0  ;;  %v698_v21 = vpop.f32.mrf.mxu1 }
 0x229   :  { %v1460_v22 = vmul.f32 -1.442695, %v701_v19  ;;  %v711_v27 = vadd.f32 %v709_v26, %v657_v23  ;;  %v820_v23 = vrot.slane %v729_v52, 1 }
 0x22a   :  { %v659_v24 = vpop.f32.mrf.mxu0  ;;  %v1614_v25 = vpop.f32.mrf.mxu1 }
 0x22b   :  { %1818 = vpow2.f32 %v1460_v22  ;;  %v1461_v29 = vmul.f32 -1.442695, %v711_v27 }
 0x22d   :  { %1820 = vpow2.f32 %v1461_v29 }
 0x238   :  { %v1819_v54 = vpop.eup %1818 }
 0x239   :  { %v705_v55 = vadd.f32 1.0, %v1819_v54 }
 0x23a   :  { %v1821_v56 = vpop.eup %1820 }
 0x23b   :  { %1822 = vrcp.f32 %v705_v55  ;;  %v715_v57 = vadd.f32 1.0, %v1821_v56 }
 0x23d   :  { %1824 = vrcp.f32 %v715_v57 }
 0x248   :  { %v1823_v61 = vpop.eup %1822 }
 0x249   :  { %v718_v62 = vmul.f32 %v1823_v61, %v696_v58  ;;  %v830_v58 = vrot.slane %v729_v52, 2 }
 0x24a   :  { %v1825_v3 = vpop.eup %1824 }
 0x24b   :  { %v721_v2 = vadd.f32 %v719_v63, %v718_v62  ;;  %v723_v4 = vsub.f32 1.0, %v1825_v3  ;;  %v725_v7 = vmul.f32 %v1825_v3, %v2205_v11 }
 0x24d   :  { %1826 = vtanh.f32 %v721_v2 }
 0x25a   :  { %v1827_v5 = vpop.eup %1826 }
 0x25b   :  { %v724_v6 = vmul.f32 %v1827_v5, %v723_v4 }
 0x25d   :  { %v2249_v8 = vadd.f32 %v725_v7, %v724_v6 }
 0x25f   :  { %727 = vst [vmem:[#allocation9 + $0x1] sm:$0x1] %v2249_v8  ;;  %v730_v9 = vpack.c.bf16 %v2249_v8, %v2249_v8 }
 0x261   :  { %764 = vmatmul.mubr.bf16.vlgmr.msra.gmra.mxu0 %v730_v9  ;;  %1632 = vmatmul.mubr.bf16.vlgmr.msra.gmra.mxu1 %v730_v9 }
 0x262   :  { %843 = vmatpush1.bf16.msra.mxu0 %v2064_v30  ;;  %1636 = vmatpush3.bf16.msra.mxu1 %v2069_v32 }
 0x263   :  { %844 = vmatprep.subr.bf16.mxu0 %v2066_v31  ;;  %1637 = vmatprep.subr.bf16.mxu1 %v2002_v0 }
 0x264   :  { %874 = vmatprep.mubr.bf16.mxu0 %v2003_v1  ;;  %1651 = vmatprep.mubr.msk.bf16.mxu1 %vm2004_vm0, %v2002_v0 }
 0x266   :  { %845 = vmatpush1.bf16.msra.mxu0 %v2072_v33  ;;  %1638 = vmatpush3.bf16.msra.mxu1 %v2079_v35 }
 0x267   :  { %846 = vmatprep.subr.bf16.mxu0 %v2075_v34  ;;  %1639 = vmatprep.subr.bf16.mxu1 %v2002_v0 }
 0x26a   :  { %847 = vmatpush1.bf16.msra.mxu0 %v2086_v36  ;;  %1640 = vmatpush3.bf16.msra.mxu1 %v2092_v38 }
 0x26b   :  { %848 = vmatprep.subr.bf16.mxu0 %v2089_v37  ;;  %1641 = vmatprep.subr.bf16.mxu1 %v2002_v0 }
 0x26e   :  { %849 = vmatpush1.bf16.msra.mxu0 %v2096_v39  ;;  %1642 = vmatpush3.bf16.msra.mxu1 %v2102_v41 }
 0x26f   :  { %850 = vmatprep.subr.bf16.mxu0 %v2099_v40  ;;  %1643 = vmatprep.subr.bf16.mxu1 %v2002_v0 }
 0x272   :  { %851 = vmatpush1.bf16.msra.mxu0 %v2106_v42  ;;  %1644 = vmatpush3.bf16.msra.mxu1 %v2112_v44 }
 0x273   :  { %852 = vmatprep.subr.bf16.mxu0 %v2109_v43  ;;  %1645 = vmatprep.subr.bf16.mxu1 %v2002_v0 }
 0x276   :  { %853 = vmatpush1.bf16.msra.mxu0 %v2116_v45  ;;  %1646 = vmatpush3.bf16.msra.mxu1 %v2122_v47 }
 0x277   :  { %854 = vmatprep.subr.bf16.mxu0 %v2119_v46  ;;  %1647 = vmatprep.subr.bf16.mxu1 %v2002_v0 }
 0x27a   :  { %855 = vmatpush1.bf16.msra.mxu0 %v2126_v48  ;;  %1648 = vmatpush3.bf16.msra.mxu1 %v2132_v50 }
 0x27b   :  { %856 = vmatprep.subr.bf16.mxu0 %v2129_v49  ;;  %1649 = vmatprep.subr.bf16.mxu1 %v2002_v0 }
 0x27e   :  { %857 = vmatpush1.bf16.msra.mxu0 %v2136_v51  ;;  %1650 = vmatpush3.bf16.msra.mxu1 %v2145_v53 }
 0x27f   :  { %953 = vmatprep.subr.bf16.mxu0 %v2061_v28  ;;  %1655 = vmatprep.subr.bf16.mxu1 %v2002_v0 }
 0x321   :  { %v765_v10 = vpop.f32.mrf.mxu0  ;;  %v806_v11 = vpop.f32.mrf.mxu1 }
 0x322   :  { %v766_v59 = vadd.f32 %v765_v10, %v2195_v14  ;;  %v807_v55 = vadd.f32 %v806_v11, %v2201_v60  ;;  %v840_v10 = vld [vmem:[#allocation2 + $0x3] ss:$8 sm:$0x7] }
 0x323   :  { %v767_v12 = vpop.f32.mrf.mxu0  ;;  %v1633_v13 = vpop.f32.mrf.mxu1 }
 0x324   :  { %v812_v15 = vadd.f32 %v766_v59, %v729_v52  ;;  %v768_v20 = vadd.f32 %v767_v12, %v2197_v16 }
 0x325   :  { %v769_v17 = vpop.f32.mrf.mxu0  ;;  %v809_v18 = vpop.f32.mrf.mxu1 }
 0x326   :  { %v1462_v19 = vmul.f32 -1.442695, %v812_v15  ;;  %v822_v24 = vadd.f32 %v820_v23, %v768_v20  ;;  %v931_v20 = vrot.slane %v840_v10, 1 }
 0x327   :  { %v770_v21 = vpop.f32.mrf.mxu0  ;;  %v1634_v22 = vpop.f32.mrf.mxu1 }
 0x328   :  { %1828 = vpow2.f32 %v1462_v19  ;;  %v1463_v25 = vmul.f32 -1.442695, %v822_v24 }
 0x32a   :  { %1830 = vpow2.f32 %v1463_v25 }
 0x335   :  { %v1829_v26 = vpop.eup %1828 }
 0x336   :  { %v816_v27 = vadd.f32 1.0, %v1829_v26 }
 0x337   :  { %v1831_v29 = vpop.eup %1830 }
 0x338   :  { %1832 = vrcp.f32 %v816_v27  ;;  %v826_v54 = vadd.f32 1.0, %v1831_v29 }
 0x33a   :  { %1834 = vrcp.f32 %v826_v54 }
 0x345   :  { %v1833_v56 = vpop.eup %1832 }
 0x346   :  { %v829_v57 = vmul.f32 %v1833_v56, %v807_v55  ;;  %v941_v55 = vrot.slane %v840_v10, 2 }
 0x347   :  { %v1835_v62 = vpop.eup %1834 }
 0x348   :  { %v832_v61 = vadd.f32 %v830_v58, %v829_v57  ;;  %v834_v63 = vsub.f32 1.0, %v1835_v62  ;;  %v836_v4 = vmul.f32 %v1835_v62, %v2249_v8 }
 0x34a   :  { %1836 = vtanh.f32 %v832_v61 }
 0x357   :  { %v1837_v2 = vpop.eup %1836 }
 0x358   :  { %v835_v3 = vmul.f32 %v1837_v2, %v834_v63 }
 0x35a   :  { %v2293_v5 = vadd.f32 %v836_v4, %v835_v3 }
 0x35c   :  { %838 = vst [vmem:[#allocation9 + $0x2] sm:$0x1] %v2293_v5  ;;  %v841_v6 = vpack.c.bf16 %v2293_v5, %v2293_v5 }
 0x35e   :  { %875 = vmatmul.mubr.bf16.vlgmr.msra.gmra.mxu0 %v841_v6  ;;  %1652 = vmatmul.mubr.bf16.vlgmr.msra.gmra.mxu1 %v841_v6 }
 0x35f   :  { %954 = vmatpush1.bf16.msra.mxu0 %v2064_v30  ;;  %1656 = vmatpush3.bf16.msra.mxu1 %v2069_v32 }
 0x360   :  { %955 = vmatprep.subr.bf16.mxu0 %v2066_v31  ;;  %1657 = vmatprep.subr.bf16.mxu1 %v2002_v0 }
 0x361   :  { %985 = vmatprep.mubr.bf16.mxu0 %v2003_v1  ;;  %1671 = vmatprep.mubr.msk.bf16.mxu1 %vm2004_vm0, %v2002_v0 }
 0x363   :  { %956 = vmatpush1.bf16.msra.mxu0 %v2072_v33  ;;  %1658 = vmatpush3.bf16.msra.mxu1 %v2079_v35 }
 0x364   :  { %957 = vmatprep.subr.bf16.mxu0 %v2075_v34  ;;  %1659 = vmatprep.subr.bf16.mxu1 %v2002_v0 }
 0x367   :  { %958 = vmatpush1.bf16.msra.mxu0 %v2086_v36  ;;  %1660 = vmatpush3.bf16.msra.mxu1 %v2092_v38 }
 0x368   :  { %959 = vmatprep.subr.bf16.mxu0 %v2089_v37  ;;  %1661 = vmatprep.subr.bf16.mxu1 %v2002_v0 }
 0x36b   :  { %960 = vmatpush1.bf16.msra.mxu0 %v2096_v39  ;;  %1662 = vmatpush3.bf16.msra.mxu1 %v2102_v41 }
 0x36c   :  { %961 = vmatprep.subr.bf16.mxu0 %v2099_v40  ;;  %1663 = vmatprep.subr.bf16.mxu1 %v2002_v0 }
 0x36f   :  { %962 = vmatpush1.bf16.msra.mxu0 %v2106_v42  ;;  %1664 = vmatpush3.bf16.msra.mxu1 %v2112_v44 }
 0x370   :  { %963 = vmatprep.subr.bf16.mxu0 %v2109_v43  ;;  %1665 = vmatprep.subr.bf16.mxu1 %v2002_v0 }
 0x373   :  { %964 = vmatpush1.bf16.msra.mxu0 %v2116_v45  ;;  %1666 = vmatpush3.bf16.msra.mxu1 %v2122_v47 }
 0x374   :  { %965 = vmatprep.subr.bf16.mxu0 %v2119_v46  ;;  %1667 = vmatprep.subr.bf16.mxu1 %v2002_v0 }
 0x377   :  { %966 = vmatpush1.bf16.msra.mxu0 %v2126_v48  ;;  %1668 = vmatpush3.bf16.msra.mxu1 %v2132_v50 }
 0x378   :  { %967 = vmatprep.subr.bf16.mxu0 %v2129_v49  ;;  %1669 = vmatprep.subr.bf16.mxu1 %v2002_v0 }
 0x37b   :  { %968 = vmatpush1.bf16.msra.mxu0 %v2136_v51  ;;  %1670 = vmatpush3.bf16.msra.mxu1 %v2145_v53 }
 0x37c   :  { %1064 = vmatprep.subr.bf16.mxu0 %v2061_v28  ;;  %1675 = vmatprep.subr.bf16.mxu1 %v2002_v0 }
 0x41e   :  { %v876_v7 = vpop.f32.mrf.mxu0  ;;  %v917_v8 = vpop.f32.mrf.mxu1 }
 0x41f   :  { %v877_v9 = vadd.f32 %v876_v7, %v2195_v14  ;;  %v918_v27 = vadd.f32 %v917_v8, %v2201_v60  ;;  %v951_v7 = vld [vmem:[#allocation2 + $0x4] ss:$8 sm:$0x7] }
 0x420   :  { %v878_v11 = vpop.f32.mrf.mxu0  ;;  %v1653_v59 = vpop.f32.mrf.mxu1 }
 0x421   :  { %v923_v52 = vadd.f32 %v877_v9, %v840_v10  ;;  %v879_v17 = vadd.f32 %v878_v11, %v2197_v16 }
 0x422   :  { %v880_v12 = vpop.f32.mrf.mxu0  ;;  %v920_v13 = vpop.f32.mrf.mxu1 }
 0x423   :  { %v1464_v15 = vmul.f32 -1.442695, %v923_v52  ;;  %v933_v21 = vadd.f32 %v931_v20, %v879_v17  ;;  %v1042_v17 = vrot.slane %v951_v7, 1 }
 0x424   :  { %v881_v18 = vpop.f32.mrf.mxu0  ;;  %v1654_v19 = vpop.f32.mrf.mxu1 }
 0x425   :  { %1838 = vpow2.f32 %v1464_v15  ;;  %v1465_v22 = vmul.f32 -1.442695, %v933_v21 }
 0x427   :  { %1840 = vpow2.f32 %v1465_v22 }
 0x432   :  { %v1839_v23 = vpop.eup %1838 }
 0x433   :  { %v927_v24 = vadd.f32 1.0, %v1839_v23 }
 0x434   :  { %v1841_v25 = vpop.eup %1840 }
 0x435   :  { %1842 = vrcp.f32 %v927_v24  ;;  %v937_v26 = vadd.f32 1.0, %v1841_v25 }
 0x437   :  { %1844 = vrcp.f32 %v937_v26  ;;  %v1052_v26 = vrot.slane %v951_v7, 2 }
 0x442   :  { %v1843_v29 = vpop.eup %1842 }
 0x443   :  { %v940_v54 = vmul.f32 %v1843_v29, %v918_v27 }
 0x444   :  { %v1845_v57 = vpop.eup %1844 }
 0x445   :  { %v943_v56 = vadd.f32 %v941_v55, %v940_v54  ;;  %v945_v58 = vsub.f32 1.0, %v1845_v57  ;;  %v947_v63 = vmul.f32 %v1845_v57, %v2293_v5 }
 0x447   :  { %1846 = vtanh.f32 %v943_v56 }
 0x454   :  { %v1847_v61 = vpop.eup %1846 }
 0x455   :  { %v946_v62 = vmul.f32 %v1847_v61, %v945_v58 }
 0x457   :  { %v2337_v2 = vadd.f32 %v947_v63, %v946_v62 }
 0x459   :  { %949 = vst [vmem:[#allocation9 + $0x3] sm:$0x1] %v2337_v2  ;;  %v952_v3 = vpack.c.bf16 %v2337_v2, %v2337_v2 }
 0x45b   :  { %986 = vmatmul.mubr.bf16.vlgmr.msra.gmra.mxu0 %v952_v3  ;;  %1672 = vmatmul.mubr.bf16.vlgmr.msra.gmra.mxu1 %v952_v3 }
 0x45c   :  { %1065 = vmatpush1.bf16.msra.mxu0 %v2064_v30  ;;  %1676 = vmatpush3.bf16.msra.mxu1 %v2069_v32 }
 0x45d   :  { %1066 = vmatprep.subr.bf16.mxu0 %v2066_v31  ;;  %1677 = vmatprep.subr.bf16.mxu1 %v2002_v0 }
 0x45e   :  { %1096 = vmatprep.mubr.bf16.mxu0 %v2003_v1  ;;  %1691 = vmatprep.mubr.msk.bf16.mxu1 %vm2004_vm0, %v2002_v0 }
 0x460   :  { %1067 = vmatpush1.bf16.msra.mxu0 %v2072_v33  ;;  %1678 = vmatpush3.bf16.msra.mxu1 %v2079_v35 }
 0x461   :  { %1068 = vmatprep.subr.bf16.mxu0 %v2075_v34  ;;  %1679 = vmatprep.subr.bf16.mxu1 %v2002_v0 }
 0x464   :  { %1069 = vmatpush1.bf16.msra.mxu0 %v2086_v36  ;;  %1680 = vmatpush3.bf16.msra.mxu1 %v2092_v38 }
 0x465   :  { %1070 = vmatprep.subr.bf16.mxu0 %v2089_v37  ;;  %1681 = vmatprep.subr.bf16.mxu1 %v2002_v0 }
 0x468   :  { %1071 = vmatpush1.bf16.msra.mxu0 %v2096_v39  ;;  %1682 = vmatpush3.bf16.msra.mxu1 %v2102_v41 }
 0x469   :  { %1072 = vmatprep.subr.bf16.mxu0 %v2099_v40  ;;  %1683 = vmatprep.subr.bf16.mxu1 %v2002_v0 }
 0x46c   :  { %1073 = vmatpush1.bf16.msra.mxu0 %v2106_v42  ;;  %1684 = vmatpush3.bf16.msra.mxu1 %v2112_v44 }
 0x46d   :  { %1074 = vmatprep.subr.bf16.mxu0 %v2109_v43  ;;  %1685 = vmatprep.subr.bf16.mxu1 %v2002_v0 }
 0x470   :  { %1075 = vmatpush1.bf16.msra.mxu0 %v2116_v45  ;;  %1686 = vmatpush3.bf16.msra.mxu1 %v2122_v47 }
 0x471   :  { %1076 = vmatprep.subr.bf16.mxu0 %v2119_v46  ;;  %1687 = vmatprep.subr.bf16.mxu1 %v2002_v0 }
 0x474   :  { %1077 = vmatpush1.bf16.msra.mxu0 %v2126_v48  ;;  %1688 = vmatpush3.bf16.msra.mxu1 %v2132_v50 }
 0x475   :  { %1078 = vmatprep.subr.bf16.mxu0 %v2129_v49  ;;  %1689 = vmatprep.subr.bf16.mxu1 %v2002_v0 }
 0x478   :  { %1079 = vmatpush1.bf16.msra.mxu0 %v2136_v51  ;;  %1690 = vmatpush3.bf16.msra.mxu1 %v2145_v53 }
 0x479   :  { %1175 = vmatprep.subr.bf16.mxu0 %v2061_v28  ;;  %1695 = vmatprep.subr.bf16.mxu1 %v2002_v0 }
 0x51b   :  { %v987_v4 = vpop.f32.mrf.mxu0  ;;  %v1028_v5 = vpop.f32.mrf.mxu1 }
 0x51c   :  { %v988_v6 = vadd.f32 %v987_v4, %v2195_v14  ;;  %v1029_v23 = vadd.f32 %v1028_v5, %v2201_v60 }
 0x51d   :  { %v989_v8 = vpop.f32.mrf.mxu0  ;;  %v1673_v9 = vpop.f32.mrf.mxu1 }
 0x51e   :  { %v1034_v10 = vadd.f32 %v988_v6, %v951_v7  ;;  %v990_v12 = vadd.f32 %v989_v8, %v2197_v16 }
 0x51f   :  { %v991_v11 = vpop.f32.mrf.mxu0  ;;  %v1031_v59 = vpop.f32.mrf.mxu1 }
 0x520   :  { %v1466_v52 = vmul.f32 -1.442695, %v1034_v10  ;;  %v1044_v28 = vadd.f32 %v1042_v17, %v990_v12  ;;  %v1889_v11 = vld [vmem:[#allocation8 + $0xa8] ss:$12 sps:$4 sm:$0xff]   ;;  %v1890_v59 = vld [vmem:[#allocation8 + $0xb0] ss:$12 sps:$4 sm:$0xff]  }
 0x521   :  { %v992_v13 = vpop.f32.mrf.mxu0  ;;  %v1674_v15 = vpop.f32.mrf.mxu1  ;;  %v1892_v12 = vld [vmem:[#allocation8 + $0x90] ss:$12 sps:$4 sm:$0xff]   ;;  %v1895_v17 = vld [vmem:[#allocation8 + $0x78] ss:$12 sps:$4 sm:$0xff]  }
 0x522   :  { %1848 = vpow2.f32 %v1466_v52  ;;  %v1467_v18 = vmul.f32 -1.442695, %v1044_v28  ;;  %v1891_v52 = vld [vmem:[#allocation8 + $0x94] ss:$12 sps:$4 sm:$0xff]   ;;  %v1893_v13 = vld [vmem:[#allocation8 + $0x98] ss:$12 sps:$4 sm:$0xff]  }
 0x523   :  { %v1894_v15 = vld [vmem:[#allocation8 + $0x7c] ss:$12 sps:$4 sm:$0xff]   ;;  %v1896_v28 = vld [vmem:[#allocation8 + $0x80] ss:$12 sps:$4 sm:$0xff]  }
 0x524   :  { %1850 = vpow2.f32 %v1467_v18  ;;  %v1897_v18 = vld [vmem:[#allocation8 + $0x64] ss:$12 sps:$4 sm:$0xff]  }
 0x52f   :  { %v1849_v19 = vpop.eup %1848 }
 0x530   :  { %v1038_v20 = vadd.f32 1.0, %v1849_v19  ;;  %v1899_v19 = vld [vmem:[#allocation8 + $0x68] ss:$12 sps:$4 sm:$0xff]  }
 0x531   :  { %v1851_v21 = vpop.eup %1850 }
 0x532   :  { %1852 = vrcp.f32 %v1038_v20  ;;  %v1048_v22 = vadd.f32 1.0, %v1851_v21  ;;  %v1900_v20 = vld [vmem:[#allocation8 + $0x4c] ss:$12 sps:$4 sm:$0xff]   ;;  %v1901_v21 = vld [vmem:[#allocation8 + $0x48] ss:$12 sps:$4 sm:$0xff]  }
 0x534   :  { %1854 = vrcp.f32 %v1048_v22  ;;  %v1902_v22 = vld [vmem:[#allocation8 + $0x50] ss:$12 sps:$4 sm:$0xff]  }
 0x53f   :  { %v1853_v24 = vpop.eup %1852 }
 0x540   :  { %v1051_v25 = vmul.f32 %v1853_v24, %v1029_v23  ;;  %v1903_v23 = vld [vmem:[#allocation8 + $0x34] ss:$12 sps:$4 sm:$0xff]   ;;  %v1904_v24 = vld [vmem:[#allocation8 + $0x30] ss:$12 sps:$4 sm:$0xff]  }
 0x541   :  { %v1855_v29 = vpop.eup %1854 }
 0x542   :  { %v1054_v27 = vadd.f32 %v1052_v26, %v1051_v25  ;;  %v1056_v54 = vsub.f32 1.0, %v1855_v29  ;;  %v1058_v57 = vmul.f32 %v1855_v29, %v2337_v2  ;;  %v1905_v25 = vld [vmem:[#allocation8 + $0x38] ss:$12 sps:$4 sm:$0xff]   ;;  %v1906_v26 = vld [vmem:[#allocation8 + $0x1c] ss:$12 sps:$4 sm:$0xff]  }
 0x543   :  { %v1908_v29 = vld [vmem:[#allocation8 + $0x20] ss:$12 sps:$4 sm:$0xff]  }
 0x544   :  { %1856 = vtanh.f32 %v1054_v27  ;;  %v1907_v27 = vld [vmem:[#allocation8 + $0x18] ss:$12 sps:$4 sm:$0xff]  }
 0x551   :  { %v1857_v55 = vpop.eup %1856 }
 0x552   :  { %v1057_v56 = vmul.f32 %v1857_v55, %v1056_v54  ;;  %v1909_v54 = vld [vmem:[#allocation8 + $0x4] ss:$12 sps:$4 sm:$0xff]   ;;  %v1910_v55 = vld [vmem:[#allocation8] ss:$12 sps:$4 sm:$0xff]  }
 0x554   :  { %v2381_v58 = vadd.f32 %v1058_v57, %v1057_v56 }
 0x556   :  { %1060 = vst [vmem:[#allocation9 + $0x4] sm:$0x1] %v2381_v58  ;;  %v1063_v61 = vpack.c.bf16 %v2381_v58, %v2381_v58 }
 0x558   :  { %1097 = vmatmul.mubr.bf16.vlgmr.msra.gmra.mxu0 %v1063_v61  ;;  %1692 = vmatmul.mubr.bf16.vlgmr.msra.gmra.mxu1 %v1063_v61  ;;  %v1173_v61 = vld [vmem:[#allocation2 + $0x6] ss:$8 sm:$0x7] }
 0x559   :  { %1176 = vmatpush1.bf16.msra.mxu0 %v2064_v30  ;;  %1696 = vmatpush3.bf16.msra.mxu1 %v2069_v32  ;;  %v1888_v30 = vld [vmem:[#allocation8 + $0xac] ss:$12 sps:$4 sm:$0xff]  }
 0x55a   :  { %1177 = vmatprep.subr.bf16.mxu0 %v2066_v31  ;;  %1697 = vmatprep.subr.bf16.mxu1 %v2002_v0 }
 0x55b   :  { %1207 = vmatprep.mubr.bf16.mxu0 %v2003_v1  ;;  %1711 = vmatprep.mubr.msk.bf16.mxu1 %vm2004_vm0, %v2002_v0 }
 0x55d   :  { %1178 = vmatpush1.bf16.msra.mxu0 %v2072_v33  ;;  %1698 = vmatpush3.bf16.msra.mxu1 %v2079_v35 }
 0x55e   :  { %1179 = vmatprep.subr.bf16.mxu0 %v2075_v34  ;;  %1699 = vmatprep.subr.bf16.mxu1 %v2002_v0  ;;  %v1062_v34 = vld [vmem:[#allocation2 + $0x5] ss:$8 sm:$0x7] }
 0x55f   :  { %v1163_v2 = vrot.slane %v1062_v34, 2 }
 0x561   :  { %1180 = vmatpush1.bf16.msra.mxu0 %v2086_v36  ;;  %1700 = vmatpush3.bf16.msra.mxu1 %v2092_v38 }
 0x562   :  { %1181 = vmatprep.subr.bf16.mxu0 %v2089_v37  ;;  %1701 = vmatprep.subr.bf16.mxu1 %v2002_v0 }
 0x565   :  { %1182 = vmatpush1.bf16.msra.mxu0 %v2096_v39  ;;  %1702 = vmatpush3.bf16.msra.mxu1 %v2102_v41 }
 0x566   :  { %1183 = vmatprep.subr.bf16.mxu0 %v2099_v40  ;;  %1703 = vmatprep.subr.bf16.mxu1 %v2002_v0 }
 0x569   :  { %1184 = vmatpush1.bf16.msra.mxu0 %v2106_v42  ;;  %1704 = vmatpush3.bf16.msra.mxu1 %v2112_v44  ;;  %v1153_v44 = vrot.slane %v1062_v34, 1 }
 0x56a   :  { %1185 = vmatprep.subr.bf16.mxu0 %v2109_v43  ;;  %1705 = vmatprep.subr.bf16.mxu1 %v2002_v0 }
 0x56d   :  { %1186 = vmatpush1.bf16.msra.mxu0 %v2116_v45  ;;  %1706 = vmatpush3.bf16.msra.mxu1 %v2122_v47 }
 0x56e   :  { %1187 = vmatprep.subr.bf16.mxu0 %v2119_v46  ;;  %1707 = vmatprep.subr.bf16.mxu1 %v2002_v0 }
 0x571   :  { %1188 = vmatpush1.bf16.msra.mxu0 %v2126_v48  ;;  %1708 = vmatpush3.bf16.msra.mxu1 %v2132_v50 }
 0x572   :  { %1189 = vmatprep.subr.bf16.mxu0 %v2129_v49  ;;  %1709 = vmatprep.subr.bf16.mxu1 %v2002_v0 }
 0x575   :  { %1190 = vmatpush1.bf16.msra.mxu0 %v2136_v51  ;;  %1710 = vmatpush3.bf16.msra.mxu1 %v2145_v53 }
 0x576   :  { %1286 = vmatprep.subr.bf16.mxu0 %v1888_v30  ;;  %1715 = vmatprep.subr.bf16.mxu1 %v2002_v0 }
 0x618   :  { %v1098_v31 = vpop.f32.mrf.mxu0  ;;  %v1139_v32 = vpop.f32.mrf.mxu1 }
 0x619   :  { %v1099_v33 = vadd.f32 %v1098_v31, %v2195_v14  ;;  %v1140_v51 = vadd.f32 %v1139_v32, %v2201_v60 }
 0x61a   :  { %v1100_v35 = vpop.f32.mrf.mxu0  ;;  %v1693_v36 = vpop.f32.mrf.mxu1 }
 0x61b   :  { %v1145_v37 = vadd.f32 %v1099_v33, %v1062_v34  ;;  %v1101_v41 = vadd.f32 %v1100_v35, %v2197_v16 }
 0x61c   :  { %v1102_v38 = vpop.f32.mrf.mxu0  ;;  %v1142_v39 = vpop.f32.mrf.mxu1 }
 0x61d   :  { %v1468_v40 = vmul.f32 -1.442695, %v1145_v37  ;;  %v1155_v45 = vadd.f32 %v1153_v44, %v1101_v41 }
 0x61e   :  { %v1103_v42 = vpop.f32.mrf.mxu0  ;;  %v1694_v43 = vpop.f32.mrf.mxu1 }
 0x61f   :  { %1858 = vpow2.f32 %v1468_v40  ;;  %v1469_v46 = vmul.f32 -1.442695, %v1155_v45 }
 0x621   :  { %1860 = vpow2.f32 %v1469_v46 }
 0x62c   :  { %v1859_v47 = vpop.eup %1858 }
 0x62d   :  { %v1149_v48 = vadd.f32 1.0, %v1859_v47  ;;  %v1274_v47 = vrot.slane %v1173_v61, 2 }
 0x62e   :  { %v1861_v49 = vpop.eup %1860 }
 0x62f   :  { %1862 = vrcp.f32 %v1149_v48  ;;  %v1159_v50 = vadd.f32 1.0, %v1861_v49 }
 0x631   :  { %1864 = vrcp.f32 %v1159_v50 }
 0x63c   :  { %v1863_v62 = vpop.eup %1862 }
 0x63d   :  { %v1162_v63 = vmul.f32 %v1863_v62, %v1140_v51 }
 0x63e   :  { %v1865_v4 = vpop.eup %1864 }
 0x63f   :  { %v1165_v3 = vadd.f32 %v1163_v2, %v1162_v63  ;;  %v1167_v5 = vsub.f32 1.0, %v1865_v4  ;;  %v1169_v8 = vmul.f32 %v1865_v4, %v2381_v58 }
 0x641   :  { %1866 = vtanh.f32 %v1165_v3 }
 0x64e   :  { %v1867_v6 = vpop.eup %1866 }
 0x64f   :  { %v1168_v7 = vmul.f32 %v1867_v6, %v1167_v5 }
 0x651   :  { %v2424_v9 = vadd.f32 %v1169_v8, %v1168_v7  ;;  %v1284_v7 = vld [vmem:[#allocation2 + $0x7] ss:$8 sm:$0x7] }
 0x653   :  { %1171 = vst [vmem:[#allocation9 + $0x5] sm:$0x1] %v2424_v9  ;;  %v1174_v10 = vpack.c.bf16 %v2424_v9, %v2424_v9 }
 0x655   :  { %1208 = vmatmul.mubr.bf16.vlgmr.msra.gmra.mxu0 %v1174_v10  ;;  %1712 = vmatmul.mubr.bf16.vlgmr.msra.gmra.mxu1 %v1174_v10 }
 0x656   :  { %1287 = vmatpush1.bf16.msra.mxu0 %v1889_v11  ;;  %1716 = vmatpush3.bf16.msra.mxu1 %v1890_v59 }
 0x657   :  { %1288 = vmatprep.subr.bf16.mxu0 %v1891_v52  ;;  %1717 = vmatprep.subr.bf16.mxu1 %v2002_v0 }
 0x658   :  { %1318 = vmatprep.mubr.bf16.mxu0 %v2003_v1  ;;  %1731 = vmatprep.mubr.msk.bf16.mxu1 %vm2004_vm0, %v2002_v0  ;;  %v1898_v1 = vld [vmem:[#allocation8 + $0x60] ss:$12 sps:$4 sm:$0xff]  }
 0x65a   :  { %1289 = vmatpush1.bf16.msra.mxu0 %v1892_v12  ;;  %1718 = vmatpush3.bf16.msra.mxu1 %v1893_v13 }
 0x65b   :  { %1290 = vmatprep.subr.bf16.mxu0 %v1894_v15  ;;  %1719 = vmatprep.subr.bf16.mxu1 %v2002_v0 }
 0x65e   :  { %1291 = vmatpush1.bf16.msra.mxu0 %v1895_v17  ;;  %1720 = vmatpush3.bf16.msra.mxu1 %v1896_v28  ;;  %v1375_v17 = vrot.slane %v1284_v7, 1 }
 0x65f   :  { %1292 = vmatprep.subr.bf16.mxu0 %v1897_v18  ;;  %1721 = vmatprep.subr.bf16.mxu1 %v2002_v0 }
 0x662   :  { %1293 = vmatpush1.bf16.msra.mxu0 %v1898_v1  ;;  %1722 = vmatpush3.bf16.msra.mxu1 %v1899_v19 }
 0x663   :  { %1294 = vmatprep.subr.bf16.mxu0 %v1900_v20  ;;  %1723 = vmatprep.subr.bf16.mxu1 %v2002_v0 }
 0x666   :  { %1295 = vmatpush1.bf16.msra.mxu0 %v1901_v21  ;;  %1724 = vmatpush3.bf16.msra.mxu1 %v1902_v22 }
 0x667   :  { %1296 = vmatprep.subr.bf16.mxu0 %v1903_v23  ;;  %1725 = vmatprep.subr.bf16.mxu1 %v2002_v0 }
 0x66a   :  { %1297 = vmatpush1.bf16.msra.mxu0 %v1904_v24  ;;  %1726 = vmatpush3.bf16.msra.mxu1 %v1905_v25  ;;  %v1385_v24 = vrot.slane %v1284_v7, 2 }
 0x66b   :  { %1298 = vmatprep.subr.bf16.mxu0 %v1906_v26  ;;  %1727 = vmatprep.subr.bf16.mxu1 %v2002_v0 }
 0x66e   :  { %1299 = vmatpush1.bf16.msra.mxu0 %v1907_v27  ;;  %1728 = vmatpush3.bf16.msra.mxu1 %v1908_v29 }
 0x66f   :  { %1300 = vmatprep.subr.bf16.mxu0 %v1909_v54  ;;  %1729 = vmatprep.subr.bf16.mxu1 %v2002_v0  ;;  %v1264_v0 = vrot.slane %v1173_v61, 1 }
 0x672   :  { %1301 = vmatpush1.bf16.msra.mxu0 %v1910_v55  ;;  %1730 = vmatpush3.bf16.msra.mxu1 %v2145_v53 }
 0x715   :  { %v1209_v56 = vpop.f32.mrf.mxu0  ;;  %v1250_v57 = vpop.f32.mrf.mxu1 }
 0x716   :  { %v1210_v58 = vadd.f32 %v1209_v56, %v2195_v14  ;;  %v1251_v44 = vadd.f32 %v1250_v57, %v2201_v60 }
 0x717   :  { %v1211_v30 = vpop.f32.mrf.mxu0  ;;  %v1713_v31 = vpop.f32.mrf.mxu1 }
 0x718   :  { %v1256_v32 = vadd.f32 %v1210_v58, %v1173_v61  ;;  %v1212_v36 = vadd.f32 %v1211_v30, %v2197_v16 }
 0x719   :  { %v1213_v33 = vpop.f32.mrf.mxu0  ;;  %v1253_v34 = vpop.f32.mrf.mxu1 }
 0x71a   :  { %v1470_v35 = vmul.f32 -1.442695, %v1256_v32  ;;  %v1266_v39 = vadd.f32 %v1264_v0, %v1212_v36 }
 0x71b   :  { %v1214_v37 = vpop.f32.mrf.mxu0  ;;  %v1714_v38 = vpop.f32.mrf.mxu1 }
 0x71c   :  { %1868 = vpow2.f32 %v1470_v35  ;;  %v1471_v40 = vmul.f32 -1.442695, %v1266_v39 }
 0x71e   :  { %1870 = vpow2.f32 %v1471_v40 }
 0x729   :  { %v1869_v53 = vpop.eup %1868 }
 0x72a   :  { %v1260_v41 = vadd.f32 1.0, %v1869_v53 }
 0x72b   :  { %v1871_v42 = vpop.eup %1870 }
 0x72c   :  { %1872 = vrcp.f32 %v1260_v41  ;;  %v1270_v43 = vadd.f32 1.0, %v1871_v42 }
 0x72e   :  { %1874 = vrcp.f32 %v1270_v43 }
 0x739   :  { %v1873_v45 = vpop.eup %1872 }
 0x73a   :  { %v1273_v46 = vmul.f32 %v1873_v45, %v1251_v44 }
 0x73b   :  { %v1875_v49 = vpop.eup %1874 }
 0x73c   :  { %v1276_v48 = vadd.f32 %v1274_v47, %v1273_v46  ;;  %v1278_v50 = vsub.f32 1.0, %v1875_v49  ;;  %v1280_v63 = vmul.f32 %v1875_v49, %v2424_v9 }
 0x73e   :  { %1876 = vtanh.f32 %v1276_v48 }
 0x74b   :  { %v1877_v51 = vpop.eup %1876 }
 0x74c   :  { %v1279_v62 = vmul.f32 %v1877_v51, %v1278_v50 }
 0x74e   :  { %v1281_v2 = vadd.f32 %v1280_v63, %v1279_v62 }
 0x750   :  { %1282 = vst [vmem:[#allocation9 + $0x6] sm:$0x1] %v1281_v2  ;;  %v1285_v3 = vpack.c.bf16 %v1281_v2, %v1281_v2 }
 0x752   :  { %1319 = vmatmul.mubr.bf16.vlgmr.msra.gmra.mxu0 %v1285_v3  ;;  %1732 = vmatmul.mubr.bf16.vlgmr.msra.gmra.mxu1 %v1285_v3 }
 0x812   :  { %v1320_v4 = vpop.f32.mrf.mxu0  ;;  %v1361_v5 = vpop.f32.mrf.mxu1 }
 0x813   :  { %v1321_v6 = vadd.f32 %v1320_v4, %v2195_v14  ;;  %v1362_v21 = vadd.f32 %v1361_v5, %v2201_v60 }
 0x814   :  { %v1322_v8 = vpop.f32.mrf.mxu0  ;;  %v1733_v10 = vpop.f32.mrf.mxu1 }
 0x815   :  { %v1367_v11 = vadd.f32 %v1321_v6, %v1284_v7  ;;  %v1323_v13 = vadd.f32 %v1322_v8, %v2197_v16 }
 0x816   :  { %v1324_v59 = vpop.f32.mrf.mxu0  ;;  %v1364_v52 = vpop.f32.mrf.mxu1 }
 0x817   :  { %v1472_v12 = vmul.f32 -1.442695, %v1367_v11  ;;  %v1377_v28 = vadd.f32 %v1375_v17, %v1323_v13 }
 0x818   :  { %v1325_v15 = vpop.f32.mrf.mxu0  ;;  %v1734_v9 = vpop.f32.mrf.mxu1 }
 0x819   :  { %1878 = vpow2.f32 %v1472_v12  ;;  %v1473_v18 = vmul.f32 -1.442695, %v1377_v28 }
 0x81b   :  { %1880 = vpow2.f32 %v1473_v18 }
 0x826   :  { %v1879_v1 = vpop.eup %1878 }
 0x827   :  { %v1371_v19 = vadd.f32 1.0, %v1879_v1 }
 0x828   :  { %v1881_v14 = vpop.eup %1880 }
 0x829   :  { %1882 = vrcp.f32 %v1371_v19  ;;  %v1381_v20 = vadd.f32 1.0, %v1881_v14 }
 0x82b   :  { %1884 = vrcp.f32 %v1381_v20 }
 0x836   :  { %v1883_v22 = vpop.eup %1882 }
 0x837   :  { %v1384_v23 = vmul.f32 %v1883_v22, %v1362_v21 }
 0x838   :  { %v1885_v16 = vpop.eup %1884 }
 0x839   :  { %v1387_v25 = vadd.f32 %v1385_v24, %v1384_v23  ;;  %v1389_v26 = vsub.f32 1.0, %v1885_v16  ;;  %v1391_v54 = vmul.f32 %v1885_v16, %v1281_v2 }
 0x83b   :  { %1886 = vtanh.f32 %v1387_v25 }
 0x848   :  { %v1887_v27 = vpop.eup %1886 }
 0x849   :  { %v1390_v29 = vmul.f32 %v1887_v27, %v1389_v26 }
 0x84b   :  { %v1392_v55 = vadd.f32 %v1391_v54, %v1390_v29 }
 0x84d   :  { %1393 = vst [vmem:[#allocation9 + $0x7] sm:$0x1] %v1392_v55 }
 0x84e   :  { %1982 = shalt.err (!%p1979_p5)
}
 0x84f   :  { %1403 = dma.vmem_to_hbm [thread:$0]  %s1401_s15, 128, %s2456_s6, [#allocation5]  }
 0x850   :  { %1995 = dma.done.wait [#allocation5], 128  }
 0x851   :  { %1996 = vsyncadd [#allocation5], 4294967168 }
 0x852   :  { %1407 = vsyncpa [#allocation4], 1 }
 0x853   :  { %1408 = vsyncpa [#allocation7], 1 }
 0x854   :  { %1409 = vsyncpa [#allocation5], 1 }

</bundles_post_ra>
